<compile_context>
chip_gen: v5e
topology: v5e:2x2
jax: 0.10.0
libtpu: 0.0.40
codegen_flags: <defaults>
</compile_context>

<pallas_src>
import functools
import math

import jax
import jax.numpy as jnp
from jax.experimental import pallas as pl
from jax.experimental.pallas import tpu as pltpu

LN_EPS = 1e-12  # BertConfig.layer_norm_eps default


def _layernorm(x, gamma, beta, eps=LN_EPS):
    mu = jnp.mean(x, axis=-1, keepdims=True)
    xc = x - mu
    var = jnp.mean(xc * xc, axis=-1, keepdims=True)
    return xc * jax.lax.rsqrt(var + eps) * gamma + beta


# ----------------------------------------------------------------------------
# Fused kernel: the whole BertSumEncoder stack.
# grid = (num_batch_blocks, num_layers); the (Bblk, S, H) activation is carried
# across the layer axis in a VMEM scratch; the scoring epilogue runs at l == L-1.
# ----------------------------------------------------------------------------
def _bertsum_encoder_kernel(
        x_ref, mask_ref,
        ng_ref, nb_ref,
        wq_ref, bq_ref, wk_ref, bk_ref, wv_ref, bv_ref, wo_ref, bo_ref,
        fg_ref, fb_ref, w1_ref, b1_ref, w2_ref, b2_ref,
        sg_ref, sb_ref, lw_ref, lb_ref,
        out_ref,
        h_ref,
        *, num_heads, num_layers):
    l = pl.program_id(1)
    bf = jnp.bfloat16

    # layer 0: load the pos-encoded input into the activation carry.
    @pl.when(l == 0)
    def _():
        h_ref[...] = x_ref[...]

    x = h_ref[...]                       # (Bblk, S, H) f32 activation carry
    mask = mask_ref[...]                 # (Bblk, 1, S) f32: 1.0 = real sentence, 0.0 = pad
    Bblk, S, H = x.shape
    dh = H // num_heads

    # pre-attention LayerNorm is skipped for layer 0 (matches BertSumEncodeLayer)
    xn_ln = _layernorm(x, ng_ref[...], nb_ref[...])
    xn = jnp.where(l == 0, x, xn_ln)

    xf = xn.astype(bf).reshape(Bblk * S, H)        # flattened rows feed the MXU M dim
    neg = (1.0 - mask) * (-1e18)                   # additive key mask (== masked_fill)

    # ---- multi-head self-attention: per-head static weight views, no activation
    #      lane-splits; 1/sqrt(dh) already folded into wq/bq at prep time. ----
    attn = None
    for n in range(num_heads):
        q = jnp.dot(xf, wq_ref[n], preferred_element_type=jnp.float32) + bq_ref[n]
        k = jnp.dot(xf, wk_ref[n], preferred_element_type=jnp.float32) + bk_ref[n]
        v = jnp.dot(xf, wv_ref[n], preferred_element_type=jnp.float32) + bv_ref[n]
        q3 = q.reshape(Bblk, S, dh).astype(bf)
        k3 = k.reshape(Bblk, S, dh).astype(bf)
        v3 = v.reshape(Bblk, S, dh).astype(bf)

        s = jnp.einsum('bqd,bkd->bqk', q3, k3,
                       preferred_element_type=jnp.float32)      # (Bblk, S, S) f32
        s = s + neg
        s = s - jnp.max(s, axis=-1, keepdims=True)
        p = jnp.exp(s)
        p = p * pl.reciprocal(jnp.sum(p, axis=-1, keepdims=True), approx=True)
        # dropout(p) == identity in eval mode
        ctx = jnp.einsum('bqk,bkd->bqd', p.astype(bf), v3,
                         preferred_element_type=jnp.float32)    # (Bblk, S, dh) f32

        part = jnp.dot(ctx.reshape(Bblk * S, dh).astype(bf), wo_ref[n],
                       preferred_element_type=jnp.float32)      # (Bblk*S, H) f32
        attn = part if attn is None else attn + part

    attn = (attn + bo_ref[...]).reshape(Bblk, S, H)
    out = attn + x                       # dropout(context) + inputs (dropout = identity)

    # ---- position-wise feed forward ----
    xn2 = _layernorm(out, fg_ref[...], fb_ref[...])
    xf2 = xn2.astype(bf).reshape(Bblk * S, H)
    inter = jnp.dot(xf2, w1_ref[...], preferred_element_type=jnp.float32) + b1_ref[...]
    inter = jax.nn.gelu(inter, approximate=True)   # tanh GELU -> EUP (small dev vs F.gelu)
    ffo = jnp.dot(inter.astype(bf), w2_ref[...],
                  preferred_element_type=jnp.float32) + b2_ref[...]
    y = ffo.reshape(Bblk, S, H) + out

    h_ref[...] = y                       # carry activation to the next layer

    # fused scoring epilogue on the last layer: LayerNorm -> H->1 -> sigmoid * mask
    @pl.when(l == num_layers - 1)
    def _():
        yn = _layernorm(y, sg_ref[...], sb_ref[...])            # (Bblk, S, H)
        logits = jnp.sum(yn * lw_ref[...][None, :, :], axis=-1) + lb_ref[0, 0]
        out_ref[...] = jax.nn.sigmoid(logits)[:, None, :] * mask


def _vmem_limit_bytes(layer_args, score_args, num_layers, Bblk, S, H, I):
    per_layer = sum(int(a.size) * a.dtype.itemsize for a in layer_args) // num_layers
    invariant = sum(int(a.size) * a.dtype.itemsize for a in score_args)
    act_blocks = 4 * (Bblk * S * H + 2 * Bblk * S)       # x + mask + out blocks (f32)
    dbuf = 2 * (per_layer + invariant + act_blocks)      # BlockSpec double-buffering
    scratch = 4 * Bblk * S * H                           # activation carry
    inter = 4 * Bblk * S * (I + 8 * H + 4 * S)           # rough live-intermediate bound
    est = dbuf + scratch + inter + (4 << 20)
    try:
        cap = int(pltpu.get_tpu_info().vmem_capacity_bytes)   # 64 MiB on v7x, 128 on v5e/v6e
    except Exception:
        cap = 64 << 20
    return int(max(16 << 20, min(cap - (16 << 20), est)))


# ----------------------------------------------------------------------------
# Parameter construction (deterministic, synthetic) + one-time weight prep
# ----------------------------------------------------------------------------
def _positional_encoding(max_len, H):
    pos = jnp.arange(max_len, dtype=jnp.float32)[:, None]
    div = jnp.exp(jnp.arange(0, H, 2, dtype=jnp.float32) * -(math.log(10000.0) / H))
    pe = jnp.zeros((max_len, H), jnp.float32)
    pe = pe.at[:, 0::2].set(jnp.sin(pos * div))
    pe = pe.at[:, 1::2].set(jnp.cos(pos * div))
    return pe


def init_params(key, vocab, H, I, num_layers, max_len=64):
    def nrm(k, shape):
        return (0.02 * jax.random.normal(k, shape)).astype(jnp.float32)

    keys = jax.random.split(key, 2 + 8 * num_layers)
    params = {
        "tok_emb": nrm(keys[0], (vocab, H)),
        "seg_emb": nrm(keys[1], (2, H)),
        "pos_enc": _positional_encoding(max_len, H),
        "norm_g": jnp.ones((1, H), jnp.float32),
        "norm_b": jnp.zeros((1, H), jnp.float32),
        "lin_w": nrm(jax.random.PRNGKey(1234), (H, 1)),
        "lin_b": jnp.zeros((1, 1), jnp.float32),
        "layers": [],
    }
    for l in range(num_layers):
        ks = keys[2 + 8 * l: 2 + 8 * (l + 1)]
        params["layers"].append({
            "norm_g": jnp.ones((1, H), jnp.float32),
            "norm_b": jnp.zeros((1, H), jnp.float32),
            "wq": nrm(ks[0], (H, H)), "bq": jnp.zeros((1, H), jnp.float32),
            "wk": nrm(ks[1], (H, H)), "bk": jnp.zeros((1, H), jnp.float32),
            "wv": nrm(ks[2], (H, H)), "bv": jnp.zeros((1, H), jnp.float32),
            "wo": nrm(ks[3], (H, H)), "bo": jnp.zeros((1, H), jnp.float32),
            "ffn_g": jnp.ones((1, H), jnp.float32),
            "ffn_b": jnp.zeros((1, H), jnp.float32),
            "w1": nrm(ks[4], (H, I)), "b1": jnp.zeros((1, I), jnp.float32),
            "w2": nrm(ks[5], (I, H)), "b2": jnp.zeros((1, H), jnp.float32),
        })
    return params


def prepare_params(params, num_heads):
    """One-time weight prep (hoisted out of the forward): fold 1/sqrt(dh) into Wq/bq,
    move the head split into the weight layout, cast weights to bf16, stack layers on
    a leading L axis so a single pallas_call pipelines them layer by layer."""
    H = params["layers"][0]["wq"].shape[0]
    nh = num_heads
    dh = H // nh
    scale = 1.0 / math.sqrt(dh)
    bf = jnp.bfloat16

    def stack(fn):
        return jnp.stack([fn(lp) for lp in params["layers"]], axis=0)

    def head_w(w):     # (H_in, H_out) -> (nh, H_in, dh)
        return jnp.transpose(w.reshape(H, nh, dh), (1, 0, 2))

    def head_b(b):     # (1, H_out) -> (nh, 1, dh)
        return b.reshape(nh, dh)[:, None, :]

    stacked = {
        "ng": stack(lambda lp: lp["norm_g"]),
        "nb": stack(lambda lp: lp["norm_b"]),
        "wq": stack(lambda lp: head_w(lp["wq"] * scale)).astype(bf),
        "bq": stack(lambda lp: head_b(lp["bq"] * scale)),
        "wk": stack(lambda lp: head_w(lp["wk"])).astype(bf),
        "bk": stack(lambda lp: head_b(lp["bk"])),
        "wv": stack(lambda lp: head_w(lp["wv"])).astype(bf),
        "bv": stack(lambda lp: head_b(lp["bv"])),
        "wo": stack(lambda lp: lp["wo"].reshape(nh, dh, H)).astype(bf),
        "bo": stack(lambda lp: lp["bo"]),
        "fg": stack(lambda lp: lp["ffn_g"]),
        "fb": stack(lambda lp: lp["ffn_b"]),
        "w1": stack(lambda lp: lp["w1"]).astype(bf),
        "b1": stack(lambda lp: lp["b1"]),
        "w2": stack(lambda lp: lp["w2"]).astype(bf),
        "b2": stack(lambda lp: lp["b2"]),
    }
    score = {
        "sg": params["norm_g"], "sb": params["norm_b"],
        "lw": params["lin_w"].reshape(1, H), "lb": params["lin_b"],
    }
    return {"stacked": stacked, "score": score,
            "pos_enc": params["pos_enc"],
            "tok_emb": params["tok_emb"], "seg_emb": params["seg_emb"]}


# ----------------------------------------------------------------------------
# Forward glue
# ----------------------------------------------------------------------------
def bertsum_encoder_forward(prepped, sentence_vector, cls_ids_mask, num_heads):
    B, S0, H = sentence_vector.shape
    st = prepped["stacked"]
    sc = prepped["score"]
    L = st["wq"].shape[0]
    nh = num_heads
    dh = H // nh
    I = st["w1"].shape[2]

    x = sentence_vector + prepped["pos_enc"][:S0][None, :, :]   # pos-enc add (no scaling)
    mask = cls_ids_mask.astype(jnp.float32)

    # pad sentence axis to a multiple of 8 (sublane alignment); padded keys are masked.
    S = max(8, ((S0 + 7) // 8) * 8)
    if S != S0:
        x = jnp.pad(x, ((0, 0), (0, S - S0), (0, 0)))
        mask = jnp.pad(mask, ((0, 0), (0, S - S0)))

    # batch block so Bblk*S fills the MXU M dimension; pad batch to a multiple of Bblk.
    Bblk = max(1, min(B, 8, (256 + S - 1) // S))
    Bp = ((B + Bblk - 1) // Bblk) * Bblk
    if Bp != B:
        x = jnp.pad(x, ((0, Bp - B), (0, 0), (0, 0)))
        mask = jnp.pad(mask, ((0, Bp - B), (0, 0)))
    mask_b1s = mask.reshape(Bp, 1, S)

    def layer_spec(*dims):        # per-layer stacked params: leading L dim squeezed
        n = len(dims)
        return pl.BlockSpec((None,) + dims, lambda b, l, n=n: (l,) + (0,) * n)

    def const_spec(shape):        # grid-invariant params
        n = len(shape)
        return pl.BlockSpec(shape, lambda b, l, n=n: (0,) * n)

    in_specs = [
        pl.BlockSpec((Bblk, S, H), lambda b, l: (b, 0, 0)),     # x (read at l == 0)
        pl.BlockSpec((Bblk, 1, S), lambda b, l: (b, 0, 0)),     # key-validity mask
        layer_spec(1, H), layer_spec(1, H),                     # input LayerNorm
        layer_spec(nh, H, dh), layer_spec(nh, 1, dh),           # Wq (pre-scaled), bq
        layer_spec(nh, H, dh), layer_spec(nh, 1, dh),           # Wk, bk
        layer_spec(nh, H, dh), layer_spec(nh, 1, dh),           # Wv, bv
        layer_spec(nh, dh, H), layer_spec(1, H),                # Wo, bo
        layer_spec(1, H), layer_spec(1, H),                     # FFN LayerNorm
        layer_spec(H, I), layer_spec(1, I),                     # W1, b1
        layer_spec(I, H), layer_spec(1, H),                     # W2, b2
        const_spec((1, H)), const_spec((1, H)),                 # final LayerNorm
        const_spec((1, H)), const_spec((1, 1)),                 # score Linear(H,1)
    ]
    layer_args = [st["ng"], st["nb"],
                  st["wq"], st["bq"], st["wk"], st["bk"], st["wv"], st["bv"],
                  st["wo"], st["bo"],
                  st["fg"], st["fb"], st["w1"], st["b1"], st["w2"], st["b2"]]
    score_args = [sc["sg"], sc["sb"], sc["lw"], sc["lb"]]
    args = [x, mask_b1s] + layer_args + score_args

    kernel = functools.partial(_bertsum_encoder_kernel,
                               num_heads=nh, num_layers=L)
    out = pl.pallas_call(
        kernel,
        out_shape=jax.ShapeDtypeStruct((Bp, 1, S), jnp.float32),
        grid=(Bp // Bblk, L),
        in_specs=in_specs,
        out_specs=pl.BlockSpec((Bblk, 1, S), lambda b, l: (b, 0, 0)),
        scratch_shapes=[pltpu.VMEM((Bblk, S, H), jnp.float32)],  # activation carry
        compiler_params=pltpu.CompilerParams(
            dimension_semantics=("parallel", "arbitrary"),
            vmem_limit_bytes=_vmem_limit_bytes(layer_args, score_args, L,
                                               Bblk, S, H, I)),
    )(*args)

    return out[:B, 0, :S0]                                       # (B, S)


def bertsum_forward(prepped, input_ids, attention_mask, segment_ids,
                    cls_ids, cls_ids_mask, cls_ids_mask_bool, num_heads):
    # TODO(synk): the pretrained BertModel backbone (loaded from checkpoint in the
    # original module) has no shape-only reconstruction; a deterministic synthetic
    # embedding stand-in produces `top_vector`.
    top_vector = prepped["tok_emb"][input_ids] + prepped["seg_emb"][segment_ids]
    top_vector = top_vector * attention_mask[:, :, None].astype(jnp.float32)

    # sentence_vector = top_vector[arange(B)[:,None], cls_ids] * cls_ids_mask[:,:,None]
    sentence_vector = jnp.take_along_axis(top_vector, cls_ids[:, :, None], axis=1)
    sentence_vector = sentence_vector * cls_ids_mask[:, :, None].astype(jnp.float32)

    del cls_ids_mask_bool  # attention mask derived from cls_ids_mask (same semantics)
    return bertsum_encoder_forward(prepped, sentence_vector, cls_ids_mask, num_heads)


if __name__ == "__main__":
    B, T, S, H, HEADS, I, LAYERS, VOCAB = 2, 16, 8, 32, 4, 64, 2, 50

    key = jax.random.PRNGKey(0)
    k_param, k_ids = jax.random.split(key)
    params = init_params(k_param, VOCAB, H, I, LAYERS)
    prepped = prepare_params(params, HEADS)          # one-time weight prep (hoisted)

    input_ids = jax.random.randint(k_ids, (B, T), 0, VOCAB)
    attention_mask = jnp.ones((B, T), jnp.float32)
    segment_ids = jnp.zeros((B, T), jnp.int32)
    cls_ids = jnp.tile(jnp.arange(0, 2 * S, 2, dtype=jnp.int32)[None, :], (B, 1))
    cls_ids_mask = jnp.array([[1.0] * S, [1.0] * 5 + [0.0] * 3], jnp.float32)
    cls_ids_mask_bool = cls_ids_mask > 0

    fwd = jax.jit(functools.partial(bertsum_forward, num_heads=HEADS))
    scores = fwd(prepped, input_ids, attention_mask, segment_ids,
                 cls_ids, cls_ids_mask, cls_ids_mask_bool)
    jax.block_until_ready(scores)
    assert scores.shape == (B, S)
    assert bool(jnp.all(jnp.isfinite(scores)))
    print("KERNEL_OK")
</pallas_src>

<mosaic_0001>
module attributes {stable_mosaic.version = 11 : i64} {
  func.func @_bertsum_encoder_kernel(%arg0: i32, %arg1: i32, %arg2: memref<2x8x32xf32, #tpu.memory_space<vmem>>, %arg3: memref<2x1x8xf32, #tpu.memory_space<vmem>>, %arg4: memref<1x1x32xf32, #tpu.memory_space<vmem>>, %arg5: memref<1x1x32xf32, #tpu.memory_space<vmem>>, %arg6: memref<1x4x32x8xbf16, #tpu.memory_space<vmem>>, %arg7: memref<1x4x1x8xf32, #tpu.memory_space<vmem>>, %arg8: memref<1x4x32x8xbf16, #tpu.memory_space<vmem>>, %arg9: memref<1x4x1x8xf32, #tpu.memory_space<vmem>>, %arg10: memref<1x4x32x8xbf16, #tpu.memory_space<vmem>>, %arg11: memref<1x4x1x8xf32, #tpu.memory_space<vmem>>, %arg12: memref<1x4x8x32xbf16, #tpu.memory_space<vmem>>, %arg13: memref<1x1x32xf32, #tpu.memory_space<vmem>>, %arg14: memref<1x1x32xf32, #tpu.memory_space<vmem>>, %arg15: memref<1x1x32xf32, #tpu.memory_space<vmem>>, %arg16: memref<1x32x64xbf16, #tpu.memory_space<vmem>>, %arg17: memref<1x1x64xf32, #tpu.memory_space<vmem>>, %arg18: memref<1x64x32xbf16, #tpu.memory_space<vmem>>, %arg19: memref<1x1x32xf32, #tpu.memory_space<vmem>>, %arg20: memref<1x32xf32, #tpu.memory_space<vmem>>, %arg21: memref<1x32xf32, #tpu.memory_space<vmem>>, %arg22: memref<1x32xf32, #tpu.memory_space<vmem>>, %arg23: memref<1x1xf32, #tpu.memory_space<vmem>>, %arg24: memref<2x1x8xf32, #tpu.memory_space<vmem>>, %arg25: memref<2x8x32xf32, #tpu.memory_space<vmem>>) attributes {dimension_semantics = [#tpu.dimension_semantics<parallel>, #tpu.dimension_semantics<arbitrary>], iteration_bounds = array<i64: 1, 2>, scalar_prefetch = 0 : i64, scratch_operands = 1 : i64, tpu.core_type = #tpu.core_type<tc>, window_params = [{transform_indices = @transform_0, window_bounds = array<i64: 2, 8, 32>}, {transform_indices = @transform_1, window_bounds = array<i64: 2, 1, 8>}, {transform_indices = @transform_2, window_bounds = array<i64: 1, 1, 32>}, {transform_indices = @transform_3, window_bounds = array<i64: 1, 1, 32>}, {transform_indices = @transform_4, window_bounds = array<i64: 1, 4, 32, 8>}, {transform_indices = @transform_5, window_bounds = array<i64: 1, 4, 1, 8>}, {transform_indices = @transform_6, window_bounds = array<i64: 1, 4, 32, 8>}, {transform_indices = @transform_7, window_bounds = array<i64: 1, 4, 1, 8>}, {transform_indices = @transform_8, window_bounds = array<i64: 1, 4, 32, 8>}, {transform_indices = @transform_9, window_bounds = array<i64: 1, 4, 1, 8>}, {transform_indices = @transform_10, window_bounds = array<i64: 1, 4, 8, 32>}, {transform_indices = @transform_11, window_bounds = array<i64: 1, 1, 32>}, {transform_indices = @transform_12, window_bounds = array<i64: 1, 1, 32>}, {transform_indices = @transform_13, window_bounds = array<i64: 1, 1, 32>}, {transform_indices = @transform_14, window_bounds = array<i64: 1, 32, 64>}, {transform_indices = @transform_15, window_bounds = array<i64: 1, 1, 64>}, {transform_indices = @transform_16, window_bounds = array<i64: 1, 64, 32>}, {transform_indices = @transform_17, window_bounds = array<i64: 1, 1, 32>}, {pipeline_mode = #tpu.pipeline_mode<synchronous>, transform_indices = @transform_18, window_bounds = array<i64: 1, 32>}, {pipeline_mode = #tpu.pipeline_mode<synchronous>, transform_indices = @transform_19, window_bounds = array<i64: 1, 32>}, {pipeline_mode = #tpu.pipeline_mode<synchronous>, transform_indices = @transform_20, window_bounds = array<i64: 1, 32>}, {pipeline_mode = #tpu.pipeline_mode<synchronous>, transform_indices = @transform_21, window_bounds = array<i64: 1, 1>}, {transform_indices = @transform_22, window_bounds = array<i64: 2, 1, 8>}]} {
    %c0_i32 = arith.constant 0 : i32
    %0 = arith.cmpi eq, %arg1, %c0_i32 : i32
    %1 = arith.extui %0 : i1 to i32
    %c0_i32_0 = arith.constant 0 : i32
    %2 = arith.cmpi ne, %1, %c0_i32_0 : i32
    scf.if %2 {
      %c0_196 = arith.constant 0 : index
      %c0_197 = arith.constant 0 : index
      %c0_198 = arith.constant 0 : index
      %298 = vector.load %arg2[%c0_196, %c0_197, %c0_198] : memref<2x8x32xf32, #tpu.memory_space<vmem>>, vector<2x8x32xf32>
      %c0_199 = arith.constant 0 : index
      %c0_200 = arith.constant 0 : index
      %c0_201 = arith.constant 0 : index
      %299 = vector.load %arg25[%c0_199, %c0_200, %c0_201] : memref<2x8x32xf32, #tpu.memory_space<vmem>>, vector<2x8x32xf32>
      tpu.vector_store %arg25[%c0_199, %c0_200, %c0_201], %298 {strides = array<i32>} : memref<2x8x32xf32, #tpu.memory_space<vmem>>, vector<2x8x32xf32>,
    } else {
    }
    %c0 = arith.constant 0 : index
    %c0_1 = arith.constant 0 : index
    %c0_2 = arith.constant 0 : index
    %3 = vector.load %arg25[%c0, %c0_1, %c0_2] : memref<2x8x32xf32, #tpu.memory_space<vmem>>, vector<2x8x32xf32>
    %c0_3 = arith.constant 0 : index
    %c0_4 = arith.constant 0 : index
    %c0_5 = arith.constant 0 : index
    %4 = vector.load %arg3[%c0_3, %c0_4, %c0_5] : memref<2x1x8xf32, #tpu.memory_space<vmem>>, vector<2x1x8xf32>
    %c0_6 = arith.constant 0 : index
    %c0_7 = arith.constant 0 : index
    %c0_8 = arith.constant 0 : index
    %5 = vector.load %arg4[%c0_6, %c0_7, %c0_8] : memref<1x1x32xf32, #tpu.memory_space<vmem>>, vector<1x1x32xf32>
    %6 = vector.shape_cast %5 : vector<1x1x32xf32> to vector<1x32xf32>
    %c0_9 = arith.constant 0 : index
    %c0_10 = arith.constant 0 : index
    %c0_11 = arith.constant 0 : index
    %7 = vector.load %arg5[%c0_9, %c0_10, %c0_11] : memref<1x1x32xf32, #tpu.memory_space<vmem>>, vector<1x1x32xf32>
    %8 = vector.shape_cast %7 : vector<1x1x32xf32> to vector<1x32xf32>
    %cst = arith.constant dense<0.000000e+00> : vector<2x8xf32>
    %9 = vector.multi_reduction <add>, %3, %cst [2] : vector<2x8x32xf32> to vector<2x8xf32>
    %10 = vector.shape_cast %9 : vector<2x8xf32> to vector<2x8x1xf32>
    %cst_12 = arith.constant 3.200000e+01 : f32
    %11 = vector.broadcast %cst_12 : f32 to vector<2x8x1xf32>
    %12 = arith.divf %10, %11 : vector<2x8x1xf32>
    %13 = vector.broadcast %12 : vector<2x8x1xf32> to vector<2x8x32xf32>
    %14 = arith.subf %3, %13 : vector<2x8x32xf32>
    %15 = arith.mulf %14, %14 : vector<2x8x32xf32>
    %cst_13 = arith.constant dense<0.000000e+00> : vector<2x8xf32>
    %16 = vector.multi_reduction <add>, %15, %cst_13 [2] : vector<2x8x32xf32> to vector<2x8xf32>
    %17 = vector.shape_cast %16 : vector<2x8xf32> to vector<2x8x1xf32>
    %cst_14 = arith.constant 3.200000e+01 : f32
    %18 = vector.broadcast %cst_14 : f32 to vector<2x8x1xf32>
    %19 = arith.divf %17, %18 : vector<2x8x1xf32>
    %cst_15 = arith.constant 9.99999996E-13 : f32
    %20 = vector.broadcast %cst_15 : f32 to vector<2x8x1xf32>
    %21 = arith.addf %19, %20 : vector<2x8x1xf32>
    %22 = math.rsqrt %21 : vector<2x8x1xf32>
    %23 = vector.broadcast %22 : vector<2x8x1xf32> to vector<2x8x32xf32>
    %24 = arith.mulf %14, %23 : vector<2x8x32xf32>
    %25 = vector.shape_cast %6 : vector<1x32xf32> to vector<1x1x32xf32>
    %26 = vector.broadcast %25 : vector<1x1x32xf32> to vector<2x8x32xf32>
    %27 = arith.mulf %24, %26 : vector<2x8x32xf32>
    %28 = vector.shape_cast %8 : vector<1x32xf32> to vector<1x1x32xf32>
    %29 = vector.broadcast %28 : vector<1x1x32xf32> to vector<2x8x32xf32>
    %30 = arith.addf %27, %29 : vector<2x8x32xf32>
    %c0_i32_16 = arith.constant 0 : i32
    %31 = arith.cmpi eq, %arg1, %c0_i32_16 : i32
    %32 = arith.select %31, %3, %30 : vector<2x8x32xf32>
    %33 = arith.truncf %32 : vector<2x8x32xf32> to vector<2x8x32xbf16>
    %34 = vector.shape_cast %33 : vector<2x8x32xbf16> to vector<16x32xbf16>
    %cst_17 = arith.constant 1.000000e+00 : f32
    %35 = vector.broadcast %cst_17 : f32 to vector<2x1x8xf32>
    %36 = arith.subf %35, %4 : vector<2x1x8xf32>
    %cst_18 = arith.constant -9.99999984E+17 : f32
    %37 = vector.broadcast %cst_18 : f32 to vector<2x1x8xf32>
    %38 = arith.mulf %36, %37 : vector<2x1x8xf32>
    %c0_19 = arith.constant 0 : index
    %c0_20 = arith.constant 0 : index
    %c0_21 = arith.constant 0 : index
    %c0_22 = arith.constant 0 : index
    %39 = vector.load %arg6[%c0_19, %c0_20, %c0_21, %c0_22] : memref<1x4x32x8xbf16, #tpu.memory_space<vmem>>, vector<1x1x32x8xbf16>
    %40 = vector.shape_cast %39 : vector<1x1x32x8xbf16> to vector<32x8xbf16>
    %cst_23 = arith.constant dense<0.000000e+00> : vector<16x8xf32>
    %41 = tpu.matmul %34, %40, %cst_23 {dimension_numbers = #tpu.dot_dimension_numbers<[1], [0], [0], [1], [0, 0, 1, 1], [], []>} : vector<16x32xbf16>, vector<32x8xbf16>, vector<16x8xf32> -> vector<16x8xf32>
    %c0_24 = arith.constant 0 : index
    %c0_25 = arith.constant 0 : index
    %c0_26 = arith.constant 0 : index
    %c0_27 = arith.constant 0 : index
    %42 = vector.load %arg7[%c0_24, %c0_25, %c0_26, %c0_27] : memref<1x4x1x8xf32, #tpu.memory_space<vmem>>, vector<1x1x1x8xf32>
    %43 = vector.shape_cast %42 : vector<1x1x1x8xf32> to vector<1x8xf32>
    %44 = vector.broadcast %43 : vector<1x8xf32> to vector<16x8xf32>
    %45 = arith.addf %41, %44 : vector<16x8xf32>
    %c0_28 = arith.constant 0 : index
    %c0_29 = arith.constant 0 : index
    %c0_30 = arith.constant 0 : index
    %c0_31 = arith.constant 0 : index
    %46 = vector.load %arg8[%c0_28, %c0_29, %c0_30, %c0_31] : memref<1x4x32x8xbf16, #tpu.memory_space<vmem>>, vector<1x1x32x8xbf16>
    %47 = vector.shape_cast %46 : vector<1x1x32x8xbf16> to vector<32x8xbf16>
    %cst_32 = arith.constant dense<0.000000e+00> : vector<16x8xf32>
    %48 = tpu.matmul %34, %47, %cst_32 {dimension_numbers = #tpu.dot_dimension_numbers<[1], [0], [0], [1], [0, 0, 1, 1], [], []>} : vector<16x32xbf16>, vector<32x8xbf16>, vector<16x8xf32> -> vector<16x8xf32>
    %c0_33 = arith.constant 0 : index
    %c0_34 = arith.constant 0 : index
    %c0_35 = arith.constant 0 : index
    %c0_36 = arith.constant 0 : index
    %49 = vector.load %arg9[%c0_33, %c0_34, %c0_35, %c0_36] : memref<1x4x1x8xf32, #tpu.memory_space<vmem>>, vector<1x1x1x8xf32>
    %50 = vector.shape_cast %49 : vector<1x1x1x8xf32> to vector<1x8xf32>
    %51 = vector.broadcast %50 : vector<1x8xf32> to vector<16x8xf32>
    %52 = arith.addf %48, %51 : vector<16x8xf32>
    %c0_37 = arith.constant 0 : index
    %c0_38 = arith.constant 0 : index
    %c0_39 = arith.constant 0 : index
    %c0_40 = arith.constant 0 : index
    %53 = vector.load %arg10[%c0_37, %c0_38, %c0_39, %c0_40] : memref<1x4x32x8xbf16, #tpu.memory_space<vmem>>, vector<1x1x32x8xbf16>
    %54 = vector.shape_cast %53 : vector<1x1x32x8xbf16> to vector<32x8xbf16>
    %cst_41 = arith.constant dense<0.000000e+00> : vector<16x8xf32>
    %55 = tpu.matmul %34, %54, %cst_41 {dimension_numbers = #tpu.dot_dimension_numbers<[1], [0], [0], [1], [0, 0, 1, 1], [], []>} : vector<16x32xbf16>, vector<32x8xbf16>, vector<16x8xf32> -> vector<16x8xf32>
    %c0_42 = arith.constant 0 : index
    %c0_43 = arith.constant 0 : index
    %c0_44 = arith.constant 0 : index
    %c0_45 = arith.constant 0 : index
    %56 = vector.load %arg11[%c0_42, %c0_43, %c0_44, %c0_45] : memref<1x4x1x8xf32, #tpu.memory_space<vmem>>, vector<1x1x1x8xf32>
    %57 = vector.shape_cast %56 : vector<1x1x1x8xf32> to vector<1x8xf32>
    %58 = vector.broadcast %57 : vector<1x8xf32> to vector<16x8xf32>
    %59 = arith.addf %55, %58 : vector<16x8xf32>
    %60 = vector.shape_cast %45 : vector<16x8xf32> to vector<2x8x8xf32>
    %61 = arith.truncf %60 : vector<2x8x8xf32> to vector<2x8x8xbf16>
    %62 = vector.shape_cast %52 : vector<16x8xf32> to vector<2x8x8xf32>
    %63 = arith.truncf %62 : vector<2x8x8xf32> to vector<2x8x8xbf16>
    %64 = vector.shape_cast %59 : vector<16x8xf32> to vector<2x8x8xf32>
    %65 = arith.truncf %64 : vector<2x8x8xf32> to vector<2x8x8xbf16>
    "tpu.trace_start"() <{level = 10 : i32, message = "bqd,bkd->bqk"}> : () -> ()
    %cst_46 = arith.constant dense<0.000000e+00> : vector<2x8x8xf32>
    %66 = tpu.matmul %61, %63, %cst_46 {dimension_numbers = #tpu.dot_dimension_numbers<[2], [2], [1], [1], [0, 0, 0, 1, 1, 1], [0], [0]>} : vector<2x8x8xbf16>, vector<2x8x8xbf16>, vector<2x8x8xf32> -> vector<2x8x8xf32>
    "tpu.trace_stop"() : () -> ()
    %67 = vector.broadcast %38 : vector<2x1x8xf32> to vector<2x8x8xf32>
    %68 = arith.addf %66, %67 : vector<2x8x8xf32>
    %cst_47 = arith.constant dense<0xFF800000> : vector<2x8xf32>
    %69 = vector.multi_reduction <maximumf>, %68, %cst_47 [2] : vector<2x8x8xf32> to vector<2x8xf32>
    %70 = vector.shape_cast %69 : vector<2x8xf32> to vector<2x8x1xf32>
    %71 = vector.broadcast %70 : vector<2x8x1xf32> to vector<2x8x8xf32>
    %72 = arith.subf %68, %71 : vector<2x8x8xf32>
    %73 = math.exp %72 : vector<2x8x8xf32>
    %cst_48 = arith.constant dense<0.000000e+00> : vector<2x8xf32>
    %74 = vector.multi_reduction <add>, %73, %cst_48 [2] : vector<2x8x8xf32> to vector<2x8xf32>
    %75 = vector.shape_cast %74 : vector<2x8xf32> to vector<2x8x1xf32>
    %76 = tpu.reciprocal %75 {approx = true} : vector<2x8x1xf32> -> vector<2x8x1xf32>
    %77 = vector.broadcast %76 : vector<2x8x1xf32> to vector<2x8x8xf32>
    %78 = arith.mulf %73, %77 : vector<2x8x8xf32>
    %79 = arith.truncf %78 : vector<2x8x8xf32> to vector<2x8x8xbf16>
    "tpu.trace_start"() <{level = 10 : i32, message = "bqk,bkd->bqd"}> : () -> ()
    %cst_49 = arith.constant dense<0.000000e+00> : vector<2x8x8xf32>
    %80 = tpu.matmul %79, %65, %cst_49 {dimension_numbers = #tpu.dot_dimension_numbers<[2], [1], [1], [2], [0, 0, 0, 1, 1, 2], [0], [0]>} : vector<2x8x8xbf16>, vector<2x8x8xbf16>, vector<2x8x8xf32> -> vector<2x8x8xf32>
    "tpu.trace_stop"() : () -> ()
    %81 = vector.shape_cast %80 : vector<2x8x8xf32> to vector<16x8xf32>
    %82 = arith.truncf %81 : vector<16x8xf32> to vector<16x8xbf16>
    %c0_50 = arith.constant 0 : index
    %c0_51 = arith.constant 0 : index
    %c0_52 = arith.constant 0 : index
    %c0_53 = arith.constant 0 : index
    %83 = vector.load %arg12[%c0_50, %c0_51, %c0_52, %c0_53] : memref<1x4x8x32xbf16, #tpu.memory_space<vmem>>, vector<1x1x8x32xbf16>
    %84 = vector.shape_cast %83 : vector<1x1x8x32xbf16> to vector<8x32xbf16>
    %cst_54 = arith.constant dense<0.000000e+00> : vector<16x32xf32>
    %85 = tpu.matmul %82, %84, %cst_54 {dimension_numbers = #tpu.dot_dimension_numbers<[1], [0], [0], [1], [0, 0, 1, 1], [], []>} : vector<16x8xbf16>, vector<8x32xbf16>, vector<16x32xf32> -> vector<16x32xf32>
    %c0_55 = arith.constant 0 : index
    %c1 = arith.constant 1 : index
    %c0_56 = arith.constant 0 : index
    %c0_57 = arith.constant 0 : index
    %86 = vector.load %arg6[%c0_55, %c1, %c0_56, %c0_57] : memref<1x4x32x8xbf16, #tpu.memory_space<vmem>>, vector<1x1x32x8xbf16>
    %87 = vector.shape_cast %86 : vector<1x1x32x8xbf16> to vector<32x8xbf16>
    %cst_58 = arith.constant dense<0.000000e+00> : vector<16x8xf32>
    %88 = tpu.matmul %34, %87, %cst_58 {dimension_numbers = #tpu.dot_dimension_numbers<[1], [0], [0], [1], [0, 0, 1, 1], [], []>} : vector<16x32xbf16>, vector<32x8xbf16>, vector<16x8xf32> -> vector<16x8xf32>
    %c0_59 = arith.constant 0 : index
    %c1_60 = arith.constant 1 : index
    %c0_61 = arith.constant 0 : index
    %c0_62 = arith.constant 0 : index
    %89 = vector.load %arg7[%c0_59, %c1_60, %c0_61, %c0_62] : memref<1x4x1x8xf32, #tpu.memory_space<vmem>>, vector<1x1x1x8xf32>
    %90 = vector.shape_cast %89 : vector<1x1x1x8xf32> to vector<1x8xf32>
    %91 = vector.broadcast %90 : vector<1x8xf32> to vector<16x8xf32>
    %92 = arith.addf %88, %91 : vector<16x8xf32>
    %c0_63 = arith.constant 0 : index
    %c1_64 = arith.constant 1 : index
    %c0_65 = arith.constant 0 : index
    %c0_66 = arith.constant 0 : index
    %93 = vector.load %arg8[%c0_63, %c1_64, %c0_65, %c0_66] : memref<1x4x32x8xbf16, #tpu.memory_space<vmem>>, vector<1x1x32x8xbf16>
    %94 = vector.shape_cast %93 : vector<1x1x32x8xbf16> to vector<32x8xbf16>
    %cst_67 = arith.constant dense<0.000000e+00> : vector<16x8xf32>
    %95 = tpu.matmul %34, %94, %cst_67 {dimension_numbers = #tpu.dot_dimension_numbers<[1], [0], [0], [1], [0, 0, 1, 1], [], []>} : vector<16x32xbf16>, vector<32x8xbf16>, vector<16x8xf32> -> vector<16x8xf32>
    %c0_68 = arith.constant 0 : index
    %c1_69 = arith.constant 1 : index
    %c0_70 = arith.constant 0 : index
    %c0_71 = arith.constant 0 : index
    %96 = vector.load %arg9[%c0_68, %c1_69, %c0_70, %c0_71] : memref<1x4x1x8xf32, #tpu.memory_space<vmem>>, vector<1x1x1x8xf32>
    %97 = vector.shape_cast %96 : vector<1x1x1x8xf32> to vector<1x8xf32>
    %98 = vector.broadcast %97 : vector<1x8xf32> to vector<16x8xf32>
    %99 = arith.addf %95, %98 : vector<16x8xf32>
    %c0_72 = arith.constant 0 : index
    %c1_73 = arith.constant 1 : index
    %c0_74 = arith.constant 0 : index
    %c0_75 = arith.constant 0 : index
    %100 = vector.load %arg10[%c0_72, %c1_73, %c0_74, %c0_75] : memref<1x4x32x8xbf16, #tpu.memory_space<vmem>>, vector<1x1x32x8xbf16>
    %101 = vector.shape_cast %100 : vector<1x1x32x8xbf16> to vector<32x8xbf16>
    %cst_76 = arith.constant dense<0.000000e+00> : vector<16x8xf32>
    %102 = tpu.matmul %34, %101, %cst_76 {dimension_numbers = #tpu.dot_dimension_numbers<[1], [0], [0], [1], [0, 0, 1, 1], [], []>} : vector<16x32xbf16>, vector<32x8xbf16>, vector<16x8xf32> -> vector<16x8xf32>
    %c0_77 = arith.constant 0 : index
    %c1_78 = arith.constant 1 : index
    %c0_79 = arith.constant 0 : index
    %c0_80 = arith.constant 0 : index
    %103 = vector.load %arg11[%c0_77, %c1_78, %c0_79, %c0_80] : memref<1x4x1x8xf32, #tpu.memory_space<vmem>>, vector<1x1x1x8xf32>
    %104 = vector.shape_cast %103 : vector<1x1x1x8xf32> to vector<1x8xf32>
    %105 = vector.broadcast %104 : vector<1x8xf32> to vector<16x8xf32>
    %106 = arith.addf %102, %105 : vector<16x8xf32>
    %107 = vector.shape_cast %92 : vector<16x8xf32> to vector<2x8x8xf32>
    %108 = arith.truncf %107 : vector<2x8x8xf32> to vector<2x8x8xbf16>
    %109 = vector.shape_cast %99 : vector<16x8xf32> to vector<2x8x8xf32>
    %110 = arith.truncf %109 : vector<2x8x8xf32> to vector<2x8x8xbf16>
    %111 = vector.shape_cast %106 : vector<16x8xf32> to vector<2x8x8xf32>
    %112 = arith.truncf %111 : vector<2x8x8xf32> to vector<2x8x8xbf16>
    "tpu.trace_start"() <{level = 10 : i32, message = "bqd,bkd->bqk"}> : () -> ()
    %cst_81 = arith.constant dense<0.000000e+00> : vector<2x8x8xf32>
    %113 = tpu.matmul %108, %110, %cst_81 {dimension_numbers = #tpu.dot_dimension_numbers<[2], [2], [1], [1], [0, 0, 0, 1, 1, 1], [0], [0]>} : vector<2x8x8xbf16>, vector<2x8x8xbf16>, vector<2x8x8xf32> -> vector<2x8x8xf32>
    "tpu.trace_stop"() : () -> ()
    %114 = vector.broadcast %38 : vector<2x1x8xf32> to vector<2x8x8xf32>
    %115 = arith.addf %113, %114 : vector<2x8x8xf32>
    %cst_82 = arith.constant dense<0xFF800000> : vector<2x8xf32>
    %116 = vector.multi_reduction <maximumf>, %115, %cst_82 [2] : vector<2x8x8xf32> to vector<2x8xf32>
    %117 = vector.shape_cast %116 : vector<2x8xf32> to vector<2x8x1xf32>
    %118 = vector.broadcast %117 : vector<2x8x1xf32> to vector<2x8x8xf32>
    %119 = arith.subf %115, %118 : vector<2x8x8xf32>
    %120 = math.exp %119 : vector<2x8x8xf32>
    %cst_83 = arith.constant dense<0.000000e+00> : vector<2x8xf32>
    %121 = vector.multi_reduction <add>, %120, %cst_83 [2] : vector<2x8x8xf32> to vector<2x8xf32>
    %122 = vector.shape_cast %121 : vector<2x8xf32> to vector<2x8x1xf32>
    %123 = tpu.reciprocal %122 {approx = true} : vector<2x8x1xf32> -> vector<2x8x1xf32>
    %124 = vector.broadcast %123 : vector<2x8x1xf32> to vector<2x8x8xf32>
    %125 = arith.mulf %120, %124 : vector<2x8x8xf32>
    %126 = arith.truncf %125 : vector<2x8x8xf32> to vector<2x8x8xbf16>
    "tpu.trace_start"() <{level = 10 : i32, message = "bqk,bkd->bqd"}> : () -> ()
    %cst_84 = arith.constant dense<0.000000e+00> : vector<2x8x8xf32>
    %127 = tpu.matmul %126, %112, %cst_84 {dimension_numbers = #tpu.dot_dimension_numbers<[2], [1], [1], [2], [0, 0, 0, 1, 1, 2], [0], [0]>} : vector<2x8x8xbf16>, vector<2x8x8xbf16>, vector<2x8x8xf32> -> vector<2x8x8xf32>
    "tpu.trace_stop"() : () -> ()
    %128 = vector.shape_cast %127 : vector<2x8x8xf32> to vector<16x8xf32>
    %129 = arith.truncf %128 : vector<16x8xf32> to vector<16x8xbf16>
    %c0_85 = arith.constant 0 : index
    %c1_86 = arith.constant 1 : index
    %c0_87 = arith.constant 0 : index
    %c0_88 = arith.constant 0 : index
    %130 = vector.load %arg12[%c0_85, %c1_86, %c0_87, %c0_88] : memref<1x4x8x32xbf16, #tpu.memory_space<vmem>>, vector<1x1x8x32xbf16>
    %131 = vector.shape_cast %130 : vector<1x1x8x32xbf16> to vector<8x32xbf16>
    %cst_89 = arith.constant dense<0.000000e+00> : vector<16x32xf32>
    %132 = tpu.matmul %129, %131, %cst_89 {dimension_numbers = #tpu.dot_dimension_numbers<[1], [0], [0], [1], [0, 0, 1, 1], [], []>} : vector<16x8xbf16>, vector<8x32xbf16>, vector<16x32xf32> -> vector<16x32xf32>
    %133 = arith.addf %85, %132 : vector<16x32xf32>
    %c0_90 = arith.constant 0 : index
    %c2 = arith.constant 2 : index
    %c0_91 = arith.constant 0 : index
    %c0_92 = arith.constant 0 : index
    %134 = vector.load %arg6[%c0_90, %c2, %c0_91, %c0_92] : memref<1x4x32x8xbf16, #tpu.memory_space<vmem>>, vector<1x1x32x8xbf16>
    %135 = vector.shape_cast %134 : vector<1x1x32x8xbf16> to vector<32x8xbf16>
    %cst_93 = arith.constant dense<0.000000e+00> : vector<16x8xf32>
    %136 = tpu.matmul %34, %135, %cst_93 {dimension_numbers = #tpu.dot_dimension_numbers<[1], [0], [0], [1], [0, 0, 1, 1], [], []>} : vector<16x32xbf16>, vector<32x8xbf16>, vector<16x8xf32> -> vector<16x8xf32>
    %c0_94 = arith.constant 0 : index
    %c2_95 = arith.constant 2 : index
    %c0_96 = arith.constant 0 : index
    %c0_97 = arith.constant 0 : index
    %137 = vector.load %arg7[%c0_94, %c2_95, %c0_96, %c0_97] : memref<1x4x1x8xf32, #tpu.memory_space<vmem>>, vector<1x1x1x8xf32>
    %138 = vector.shape_cast %137 : vector<1x1x1x8xf32> to vector<1x8xf32>
    %139 = vector.broadcast %138 : vector<1x8xf32> to vector<16x8xf32>
    %140 = arith.addf %136, %139 : vector<16x8xf32>
    %c0_98 = arith.constant 0 : index
    %c2_99 = arith.constant 2 : index
    %c0_100 = arith.constant 0 : index
    %c0_101 = arith.constant 0 : index
    %141 = vector.load %arg8[%c0_98, %c2_99, %c0_100, %c0_101] : memref<1x4x32x8xbf16, #tpu.memory_space<vmem>>, vector<1x1x32x8xbf16>
    %142 = vector.shape_cast %141 : vector<1x1x32x8xbf16> to vector<32x8xbf16>
    %cst_102 = arith.constant dense<0.000000e+00> : vector<16x8xf32>
    %143 = tpu.matmul %34, %142, %cst_102 {dimension_numbers = #tpu.dot_dimension_numbers<[1], [0], [0], [1], [0, 0, 1, 1], [], []>} : vector<16x32xbf16>, vector<32x8xbf16>, vector<16x8xf32> -> vector<16x8xf32>
    %c0_103 = arith.constant 0 : index
    %c2_104 = arith.constant 2 : index
    %c0_105 = arith.constant 0 : index
    %c0_106 = arith.constant 0 : index
    %144 = vector.load %arg9[%c0_103, %c2_104, %c0_105, %c0_106] : memref<1x4x1x8xf32, #tpu.memory_space<vmem>>, vector<1x1x1x8xf32>
    %145 = vector.shape_cast %144 : vector<1x1x1x8xf32> to vector<1x8xf32>
    %146 = vector.broadcast %145 : vector<1x8xf32> to vector<16x8xf32>
    %147 = arith.addf %143, %146 : vector<16x8xf32>
    %c0_107 = arith.constant 0 : index
    %c2_108 = arith.constant 2 : index
    %c0_109 = arith.constant 0 : index
    %c0_110 = arith.constant 0 : index
    %148 = vector.load %arg10[%c0_107, %c2_108, %c0_109, %c0_110] : memref<1x4x32x8xbf16, #tpu.memory_space<vmem>>, vector<1x1x32x8xbf16>
    %149 = vector.shape_cast %148 : vector<1x1x32x8xbf16> to vector<32x8xbf16>
    %cst_111 = arith.constant dense<0.000000e+00> : vector<16x8xf32>
    %150 = tpu.matmul %34, %149, %cst_111 {dimension_numbers = #tpu.dot_dimension_numbers<[1], [0], [0], [1], [0, 0, 1, 1], [], []>} : vector<16x32xbf16>, vector<32x8xbf16>, vector<16x8xf32> -> vector<16x8xf32>
    %c0_112 = arith.constant 0 : index
    %c2_113 = arith.constant 2 : index
    %c0_114 = arith.constant 0 : index
    %c0_115 = arith.constant 0 : index
    %151 = vector.load %arg11[%c0_112, %c2_113, %c0_114, %c0_115] : memref<1x4x1x8xf32, #tpu.memory_space<vmem>>, vector<1x1x1x8xf32>
    %152 = vector.shape_cast %151 : vector<1x1x1x8xf32> to vector<1x8xf32>
    %153 = vector.broadcast %152 : vector<1x8xf32> to vector<16x8xf32>
    %154 = arith.addf %150, %153 : vector<16x8xf32>
    %155 = vector.shape_cast %140 : vector<16x8xf32> to vector<2x8x8xf32>
    %156 = arith.truncf %155 : vector<2x8x8xf32> to vector<2x8x8xbf16>
    %157 = vector.shape_cast %147 : vector<16x8xf32> to vector<2x8x8xf32>
    %158 = arith.truncf %157 : vector<2x8x8xf32> to vector<2x8x8xbf16>
    %159 = vector.shape_cast %154 : vector<16x8xf32> to vector<2x8x8xf32>
    %160 = arith.truncf %159 : vector<2x8x8xf32> to vector<2x8x8xbf16>
    "tpu.trace_start"() <{level = 10 : i32, message = "bqd,bkd->bqk"}> : () -> ()
    %cst_116 = arith.constant dense<0.000000e+00> : vector<2x8x8xf32>
    %161 = tpu.matmul %156, %158, %cst_116 {dimension_numbers = #tpu.dot_dimension_numbers<[2], [2], [1], [1], [0, 0, 0, 1, 1, 1], [0], [0]>} : vector<2x8x8xbf16>, vector<2x8x8xbf16>, vector<2x8x8xf32> -> vector<2x8x8xf32>
    "tpu.trace_stop"() : () -> ()
    %162 = vector.broadcast %38 : vector<2x1x8xf32> to vector<2x8x8xf32>
    %163 = arith.addf %161, %162 : vector<2x8x8xf32>
    %cst_117 = arith.constant dense<0xFF800000> : vector<2x8xf32>
    %164 = vector.multi_reduction <maximumf>, %163, %cst_117 [2] : vector<2x8x8xf32> to vector<2x8xf32>
    %165 = vector.shape_cast %164 : vector<2x8xf32> to vector<2x8x1xf32>
    %166 = vector.broadcast %165 : vector<2x8x1xf32> to vector<2x8x8xf32>
    %167 = arith.subf %163, %166 : vector<2x8x8xf32>
    %168 = math.exp %167 : vector<2x8x8xf32>
    %cst_118 = arith.constant dense<0.000000e+00> : vector<2x8xf32>
    %169 = vector.multi_reduction <add>, %168, %cst_118 [2] : vector<2x8x8xf32> to vector<2x8xf32>
    %170 = vector.shape_cast %169 : vector<2x8xf32> to vector<2x8x1xf32>
    %171 = tpu.reciprocal %170 {approx = true} : vector<2x8x1xf32> -> vector<2x8x1xf32>
    %172 = vector.broadcast %171 : vector<2x8x1xf32> to vector<2x8x8xf32>
    %173 = arith.mulf %168, %172 : vector<2x8x8xf32>
    %174 = arith.truncf %173 : vector<2x8x8xf32> to vector<2x8x8xbf16>
    "tpu.trace_start"() <{level = 10 : i32, message = "bqk,bkd->bqd"}> : () -> ()
    %cst_119 = arith.constant dense<0.000000e+00> : vector<2x8x8xf32>
    %175 = tpu.matmul %174, %160, %cst_119 {dimension_numbers = #tpu.dot_dimension_numbers<[2], [1], [1], [2], [0, 0, 0, 1, 1, 2], [0], [0]>} : vector<2x8x8xbf16>, vector<2x8x8xbf16>, vector<2x8x8xf32> -> vector<2x8x8xf32>
    "tpu.trace_stop"() : () -> ()
    %176 = vector.shape_cast %175 : vector<2x8x8xf32> to vector<16x8xf32>
    %177 = arith.truncf %176 : vector<16x8xf32> to vector<16x8xbf16>
    %c0_120 = arith.constant 0 : index
    %c2_121 = arith.constant 2 : index
    %c0_122 = arith.constant 0 : index
    %c0_123 = arith.constant 0 : index
    %178 = vector.load %arg12[%c0_120, %c2_121, %c0_122, %c0_123] : memref<1x4x8x32xbf16, #tpu.memory_space<vmem>>, vector<1x1x8x32xbf16>
    %179 = vector.shape_cast %178 : vector<1x1x8x32xbf16> to vector<8x32xbf16>
    %cst_124 = arith.constant dense<0.000000e+00> : vector<16x32xf32>
    %180 = tpu.matmul %177, %179, %cst_124 {dimension_numbers = #tpu.dot_dimension_numbers<[1], [0], [0], [1], [0, 0, 1, 1], [], []>} : vector<16x8xbf16>, vector<8x32xbf16>, vector<16x32xf32> -> vector<16x32xf32>
    %181 = arith.addf %133, %180 : vector<16x32xf32>
    %c0_125 = arith.constant 0 : index
    %c3 = arith.constant 3 : index
    %c0_126 = arith.constant 0 : index
    %c0_127 = arith.constant 0 : index
    %182 = vector.load %arg6[%c0_125, %c3, %c0_126, %c0_127] : memref<1x4x32x8xbf16, #tpu.memory_space<vmem>>, vector<1x1x32x8xbf16>
    %183 = vector.shape_cast %182 : vector<1x1x32x8xbf16> to vector<32x8xbf16>
    %cst_128 = arith.constant dense<0.000000e+00> : vector<16x8xf32>
    %184 = tpu.matmul %34, %183, %cst_128 {dimension_numbers = #tpu.dot_dimension_numbers<[1], [0], [0], [1], [0, 0, 1, 1], [], []>} : vector<16x32xbf16>, vector<32x8xbf16>, vector<16x8xf32> -> vector<16x8xf32>
    %c0_129 = arith.constant 0 : index
    %c3_130 = arith.constant 3 : index
    %c0_131 = arith.constant 0 : index
    %c0_132 = arith.constant 0 : index
    %185 = vector.load %arg7[%c0_129, %c3_130, %c0_131, %c0_132] : memref<1x4x1x8xf32, #tpu.memory_space<vmem>>, vector<1x1x1x8xf32>
    %186 = vector.shape_cast %185 : vector<1x1x1x8xf32> to vector<1x8xf32>
    %187 = vector.broadcast %186 : vector<1x8xf32> to vector<16x8xf32>
    %188 = arith.addf %184, %187 : vector<16x8xf32>
    %c0_133 = arith.constant 0 : index
    %c3_134 = arith.constant 3 : index
    %c0_135 = arith.constant 0 : index
    %c0_136 = arith.constant 0 : index
    %189 = vector.load %arg8[%c0_133, %c3_134, %c0_135, %c0_136] : memref<1x4x32x8xbf16, #tpu.memory_space<vmem>>, vector<1x1x32x8xbf16>
    %190 = vector.shape_cast %189 : vector<1x1x32x8xbf16> to vector<32x8xbf16>
    %cst_137 = arith.constant dense<0.000000e+00> : vector<16x8xf32>
    %191 = tpu.matmul %34, %190, %cst_137 {dimension_numbers = #tpu.dot_dimension_numbers<[1], [0], [0], [1], [0, 0, 1, 1], [], []>} : vector<16x32xbf16>, vector<32x8xbf16>, vector<16x8xf32> -> vector<16x8xf32>
    %c0_138 = arith.constant 0 : index
    %c3_139 = arith.constant 3 : index
    %c0_140 = arith.constant 0 : index
    %c0_141 = arith.constant 0 : index
    %192 = vector.load %arg9[%c0_138, %c3_139, %c0_140, %c0_141] : memref<1x4x1x8xf32, #tpu.memory_space<vmem>>, vector<1x1x1x8xf32>
    %193 = vector.shape_cast %192 : vector<1x1x1x8xf32> to vector<1x8xf32>
    %194 = vector.broadcast %193 : vector<1x8xf32> to vector<16x8xf32>
    %195 = arith.addf %191, %194 : vector<16x8xf32>
    %c0_142 = arith.constant 0 : index
    %c3_143 = arith.constant 3 : index
    %c0_144 = arith.constant 0 : index
    %c0_145 = arith.constant 0 : index
    %196 = vector.load %arg10[%c0_142, %c3_143, %c0_144, %c0_145] : memref<1x4x32x8xbf16, #tpu.memory_space<vmem>>, vector<1x1x32x8xbf16>
    %197 = vector.shape_cast %196 : vector<1x1x32x8xbf16> to vector<32x8xbf16>
    %cst_146 = arith.constant dense<0.000000e+00> : vector<16x8xf32>
    %198 = tpu.matmul %34, %197, %cst_146 {dimension_numbers = #tpu.dot_dimension_numbers<[1], [0], [0], [1], [0, 0, 1, 1], [], []>} : vector<16x32xbf16>, vector<32x8xbf16>, vector<16x8xf32> -> vector<16x8xf32>
    %c0_147 = arith.constant 0 : index
    %c3_148 = arith.constant 3 : index
    %c0_149 = arith.constant 0 : index
    %c0_150 = arith.constant 0 : index
    %199 = vector.load %arg11[%c0_147, %c3_148, %c0_149, %c0_150] : memref<1x4x1x8xf32, #tpu.memory_space<vmem>>, vector<1x1x1x8xf32>
    %200 = vector.shape_cast %199 : vector<1x1x1x8xf32> to vector<1x8xf32>
    %201 = vector.broadcast %200 : vector<1x8xf32> to vector<16x8xf32>
    %202 = arith.addf %198, %201 : vector<16x8xf32>
    %203 = vector.shape_cast %188 : vector<16x8xf32> to vector<2x8x8xf32>
    %204 = arith.truncf %203 : vector<2x8x8xf32> to vector<2x8x8xbf16>
    %205 = vector.shape_cast %195 : vector<16x8xf32> to vector<2x8x8xf32>
    %206 = arith.truncf %205 : vector<2x8x8xf32> to vector<2x8x8xbf16>
    %207 = vector.shape_cast %202 : vector<16x8xf32> to vector<2x8x8xf32>
    %208 = arith.truncf %207 : vector<2x8x8xf32> to vector<2x8x8xbf16>
    "tpu.trace_start"() <{level = 10 : i32, message = "bqd,bkd->bqk"}> : () -> ()
    %cst_151 = arith.constant dense<0.000000e+00> : vector<2x8x8xf32>
    %209 = tpu.matmul %204, %206, %cst_151 {dimension_numbers = #tpu.dot_dimension_numbers<[2], [2], [1], [1], [0, 0, 0, 1, 1, 1], [0], [0]>} : vector<2x8x8xbf16>, vector<2x8x8xbf16>, vector<2x8x8xf32> -> vector<2x8x8xf32>
    "tpu.trace_stop"() : () -> ()
    %210 = vector.broadcast %38 : vector<2x1x8xf32> to vector<2x8x8xf32>
    %211 = arith.addf %209, %210 : vector<2x8x8xf32>
    %cst_152 = arith.constant dense<0xFF800000> : vector<2x8xf32>
    %212 = vector.multi_reduction <maximumf>, %211, %cst_152 [2] : vector<2x8x8xf32> to vector<2x8xf32>
    %213 = vector.shape_cast %212 : vector<2x8xf32> to vector<2x8x1xf32>
    %214 = vector.broadcast %213 : vector<2x8x1xf32> to vector<2x8x8xf32>
    %215 = arith.subf %211, %214 : vector<2x8x8xf32>
    %216 = math.exp %215 : vector<2x8x8xf32>
    %cst_153 = arith.constant dense<0.000000e+00> : vector<2x8xf32>
    %217 = vector.multi_reduction <add>, %216, %cst_153 [2] : vector<2x8x8xf32> to vector<2x8xf32>
    %218 = vector.shape_cast %217 : vector<2x8xf32> to vector<2x8x1xf32>
    %219 = tpu.reciprocal %218 {approx = true} : vector<2x8x1xf32> -> vector<2x8x1xf32>
    %220 = vector.broadcast %219 : vector<2x8x1xf32> to vector<2x8x8xf32>
    %221 = arith.mulf %216, %220 : vector<2x8x8xf32>
    %222 = arith.truncf %221 : vector<2x8x8xf32> to vector<2x8x8xbf16>
    "tpu.trace_start"() <{level = 10 : i32, message = "bqk,bkd->bqd"}> : () -> ()
    %cst_154 = arith.constant dense<0.000000e+00> : vector<2x8x8xf32>
    %223 = tpu.matmul %222, %208, %cst_154 {dimension_numbers = #tpu.dot_dimension_numbers<[2], [1], [1], [2], [0, 0, 0, 1, 1, 2], [0], [0]>} : vector<2x8x8xbf16>, vector<2x8x8xbf16>, vector<2x8x8xf32> -> vector<2x8x8xf32>
    "tpu.trace_stop"() : () -> ()
    %224 = vector.shape_cast %223 : vector<2x8x8xf32> to vector<16x8xf32>
    %225 = arith.truncf %224 : vector<16x8xf32> to vector<16x8xbf16>
    %c0_155 = arith.constant 0 : index
    %c3_156 = arith.constant 3 : index
    %c0_157 = arith.constant 0 : index
    %c0_158 = arith.constant 0 : index
    %226 = vector.load %arg12[%c0_155, %c3_156, %c0_157, %c0_158] : memref<1x4x8x32xbf16, #tpu.memory_space<vmem>>, vector<1x1x8x32xbf16>
    %227 = vector.shape_cast %226 : vector<1x1x8x32xbf16> to vector<8x32xbf16>
    %cst_159 = arith.constant dense<0.000000e+00> : vector<16x32xf32>
    %228 = tpu.matmul %225, %227, %cst_159 {dimension_numbers = #tpu.dot_dimension_numbers<[1], [0], [0], [1], [0, 0, 1, 1], [], []>} : vector<16x8xbf16>, vector<8x32xbf16>, vector<16x32xf32> -> vector<16x32xf32>
    %229 = arith.addf %181, %228 : vector<16x32xf32>
    %c0_160 = arith.constant 0 : index
    %c0_161 = arith.constant 0 : index
    %c0_162 = arith.constant 0 : index
    %230 = vector.load %arg13[%c0_160, %c0_161, %c0_162] : memref<1x1x32xf32, #tpu.memory_space<vmem>>, vector<1x1x32xf32>
    %231 = vector.shape_cast %230 : vector<1x1x32xf32> to vector<1x32xf32>
    %232 = vector.broadcast %231 : vector<1x32xf32> to vector<16x32xf32>
    %233 = arith.addf %229, %232 : vector<16x32xf32>
    %234 = vector.shape_cast %233 : vector<16x32xf32> to vector<2x8x32xf32>
    %235 = arith.addf %234, %3 : vector<2x8x32xf32>
    %c0_163 = arith.constant 0 : index
    %c0_164 = arith.constant 0 : index
    %c0_165 = arith.constant 0 : index
    %236 = vector.load %arg14[%c0_163, %c0_164, %c0_165] : memref<1x1x32xf32, #tpu.memory_space<vmem>>, vector<1x1x32xf32>
    %237 = vector.shape_cast %236 : vector<1x1x32xf32> to vector<1x32xf32>
    %c0_166 = arith.constant 0 : index
    %c0_167 = arith.constant 0 : index
    %c0_168 = arith.constant 0 : index
    %238 = vector.load %arg15[%c0_166, %c0_167, %c0_168] : memref<1x1x32xf32, #tpu.memory_space<vmem>>, vector<1x1x32xf32>
    %239 = vector.shape_cast %238 : vector<1x1x32xf32> to vector<1x32xf32>
    %cst_169 = arith.constant dense<0.000000e+00> : vector<2x8xf32>
    %240 = vector.multi_reduction <add>, %235, %cst_169 [2] : vector<2x8x32xf32> to vector<2x8xf32>
    %241 = vector.shape_cast %240 : vector<2x8xf32> to vector<2x8x1xf32>
    %cst_170 = arith.constant 3.200000e+01 : f32
    %242 = vector.broadcast %cst_170 : f32 to vector<2x8x1xf32>
    %243 = arith.divf %241, %242 : vector<2x8x1xf32>
    %244 = vector.broadcast %243 : vector<2x8x1xf32> to vector<2x8x32xf32>
    %245 = arith.subf %235, %244 : vector<2x8x32xf32>
    %246 = arith.mulf %245, %245 : vector<2x8x32xf32>
    %cst_171 = arith.constant dense<0.000000e+00> : vector<2x8xf32>
    %247 = vector.multi_reduction <add>, %246, %cst_171 [2] : vector<2x8x32xf32> to vector<2x8xf32>
    %248 = vector.shape_cast %247 : vector<2x8xf32> to vector<2x8x1xf32>
    %cst_172 = arith.constant 3.200000e+01 : f32
    %249 = vector.broadcast %cst_172 : f32 to vector<2x8x1xf32>
    %250 = arith.divf %248, %249 : vector<2x8x1xf32>
    %cst_173 = arith.constant 9.99999996E-13 : f32
    %251 = vector.broadcast %cst_173 : f32 to vector<2x8x1xf32>
    %252 = arith.addf %250, %251 : vector<2x8x1xf32>
    %253 = math.rsqrt %252 : vector<2x8x1xf32>
    %254 = vector.broadcast %253 : vector<2x8x1xf32> to vector<2x8x32xf32>
    %255 = arith.mulf %245, %254 : vector<2x8x32xf32>
    %256 = vector.shape_cast %237 : vector<1x32xf32> to vector<1x1x32xf32>
    %257 = vector.broadcast %256 : vector<1x1x32xf32> to vector<2x8x32xf32>
    %258 = arith.mulf %255, %257 : vector<2x8x32xf32>
    %259 = vector.shape_cast %239 : vector<1x32xf32> to vector<1x1x32xf32>
    %260 = vector.broadcast %259 : vector<1x1x32xf32> to vector<2x8x32xf32>
    %261 = arith.addf %258, %260 : vector<2x8x32xf32>
    %262 = arith.truncf %261 : vector<2x8x32xf32> to vector<2x8x32xbf16>
    %263 = vector.shape_cast %262 : vector<2x8x32xbf16> to vector<16x32xbf16>
    %c0_174 = arith.constant 0 : index
    %c0_175 = arith.constant 0 : index
    %c0_176 = arith.constant 0 : index
    %264 = vector.load %arg16[%c0_174, %c0_175, %c0_176] : memref<1x32x64xbf16, #tpu.memory_space<vmem>>, vector<1x32x64xbf16>
    %265 = vector.shape_cast %264 : vector<1x32x64xbf16> to vector<32x64xbf16>
    %cst_177 = arith.constant dense<0.000000e+00> : vector<16x64xf32>
    %266 = tpu.matmul %263, %265, %cst_177 {dimension_numbers = #tpu.dot_dimension_numbers<[1], [0], [0], [1], [0, 0, 1, 1], [], []>} : vector<16x32xbf16>, vector<32x64xbf16>, vector<16x64xf32> -> vector<16x64xf32>
    %c0_178 = arith.constant 0 : index
    %c0_179 = arith.constant 0 : index
    %c0_180 = arith.constant 0 : index
    %267 = vector.load %arg17[%c0_178, %c0_179, %c0_180] : memref<1x1x64xf32, #tpu.memory_space<vmem>>, vector<1x1x64xf32>
    %268 = vector.shape_cast %267 : vector<1x1x64xf32> to vector<1x64xf32>
    %269 = vector.broadcast %268 : vector<1x64xf32> to vector<16x64xf32>
    %270 = arith.addf %266, %269 : vector<16x64xf32>
    %271 = arith.mulf %270, %270 : vector<16x64xf32>
    %272 = arith.mulf %270, %271 : vector<16x64xf32>
    %cst_181 = arith.constant 4.471500e-02 : f32
    %273 = vector.broadcast %cst_181 : f32 to vector<16x64xf32>
    %274 = arith.mulf %273, %272 : vector<16x64xf32>
    %275 = arith.addf %270, %274 : vector<16x64xf32>
    %cst_182 = arith.constant 0.797884583 : f32
    %276 = vector.broadcast %cst_182 : f32 to vector<16x64xf32>
    %277 = arith.mulf %276, %275 : vector<16x64xf32>
    %278 = math.tanh %277 : vector<16x64xf32>
    %cst_183 = arith.constant 1.000000e+00 : f32
    %279 = vector.broadcast %cst_183 : f32 to vector<16x64xf32>
    %280 = arith.addf %279, %278 : vector<16x64xf32>
    %cst_184 = arith.constant 5.000000e-01 : f32
    %281 = vector.broadcast %cst_184 : f32 to vector<16x64xf32>
    %282 = arith.mulf %281, %280 : vector<16x64xf32>
    %283 = arith.mulf %270, %282 : vector<16x64xf32>
    %284 = arith.truncf %283 : vector<16x64xf32> to vector<16x64xbf16>
    %c0_185 = arith.constant 0 : index
    %c0_186 = arith.constant 0 : index
    %c0_187 = arith.constant 0 : index
    %285 = vector.load %arg18[%c0_185, %c0_186, %c0_187] : memref<1x64x32xbf16, #tpu.memory_space<vmem>>, vector<1x64x32xbf16>
    %286 = vector.shape_cast %285 : vector<1x64x32xbf16> to vector<64x32xbf16>
    %cst_188 = arith.constant dense<0.000000e+00> : vector<16x32xf32>
    %287 = tpu.matmul %284, %286, %cst_188 {dimension_numbers = #tpu.dot_dimension_numbers<[1], [0], [0], [1], [0, 0, 1, 1], [], []>} : vector<16x64xbf16>, vector<64x32xbf16>, vector<16x32xf32> -> vector<16x32xf32>
    %c0_189 = arith.constant 0 : index
    %c0_190 = arith.constant 0 : index
    %c0_191 = arith.constant 0 : index
    %288 = vector.load %arg19[%c0_189, %c0_190, %c0_191] : memref<1x1x32xf32, #tpu.memory_space<vmem>>, vector<1x1x32xf32>
    %289 = vector.shape_cast %288 : vector<1x1x32xf32> to vector<1x32xf32>
    %290 = vector.broadcast %289 : vector<1x32xf32> to vector<16x32xf32>
    %291 = arith.addf %287, %290 : vector<16x32xf32>
    %292 = vector.shape_cast %291 : vector<16x32xf32> to vector<2x8x32xf32>
    %293 = arith.addf %292, %235 : vector<2x8x32xf32>
    %c0_192 = arith.constant 0 : index
    %c0_193 = arith.constant 0 : index
    %c0_194 = arith.constant 0 : index
    %294 = vector.load %arg25[%c0_192, %c0_193, %c0_194] : memref<2x8x32xf32, #tpu.memory_space<vmem>>, vector<2x8x32xf32>
    tpu.vector_store %arg25[%c0_192, %c0_193, %c0_194], %293 {strides = array<i32>} : memref<2x8x32xf32, #tpu.memory_space<vmem>>, vector<2x8x32xf32>,
    %c1_i32 = arith.constant 1 : i32
    %295 = arith.cmpi eq, %arg1, %c1_i32 : i32
    %296 = arith.extui %295 : i1 to i32
    %c0_i32_195 = arith.constant 0 : i32
    %297 = arith.cmpi ne, %296, %c0_i32_195 : i32
    scf.if %297 {
      %c0_196 = arith.constant 0 : index
      %c0_197 = arith.constant 0 : index
      %298 = vector.load %arg20[%c0_196, %c0_197] : memref<1x32xf32, #tpu.memory_space<vmem>>, vector<1x32xf32>
      %c0_198 = arith.constant 0 : index
      %c0_199 = arith.constant 0 : index
      %299 = vector.load %arg21[%c0_198, %c0_199] : memref<1x32xf32, #tpu.memory_space<vmem>>, vector<1x32xf32>
      %cst_200 = arith.constant dense<0.000000e+00> : vector<2x8xf32>
      %300 = vector.multi_reduction <add>, %293, %cst_200 [2] : vector<2x8x32xf32> to vector<2x8xf32>
      %301 = vector.shape_cast %300 : vector<2x8xf32> to vector<2x8x1xf32>
      %cst_201 = arith.constant 3.200000e+01 : f32
      %302 = vector.broadcast %cst_201 : f32 to vector<2x8x1xf32>
      %303 = arith.divf %301, %302 : vector<2x8x1xf32>
      %304 = vector.broadcast %303 : vector<2x8x1xf32> to vector<2x8x32xf32>
      %305 = arith.subf %293, %304 : vector<2x8x32xf32>
      %306 = arith.mulf %305, %305 : vector<2x8x32xf32>
      %cst_202 = arith.constant dense<0.000000e+00> : vector<2x8xf32>
      %307 = vector.multi_reduction <add>, %306, %cst_202 [2] : vector<2x8x32xf32> to vector<2x8xf32>
      %308 = vector.shape_cast %307 : vector<2x8xf32> to vector<2x8x1xf32>
      %cst_203 = arith.constant 3.200000e+01 : f32
      %309 = vector.broadcast %cst_203 : f32 to vector<2x8x1xf32>
      %310 = arith.divf %308, %309 : vector<2x8x1xf32>
      %cst_204 = arith.constant 9.99999996E-13 : f32
      %311 = vector.broadcast %cst_204 : f32 to vector<2x8x1xf32>
      %312 = arith.addf %310, %311 : vector<2x8x1xf32>
      %313 = math.rsqrt %312 : vector<2x8x1xf32>
      %314 = vector.broadcast %313 : vector<2x8x1xf32> to vector<2x8x32xf32>
      %315 = arith.mulf %305, %314 : vector<2x8x32xf32>
      %316 = vector.shape_cast %298 : vector<1x32xf32> to vector<1x1x32xf32>
      %317 = vector.broadcast %316 : vector<1x1x32xf32> to vector<2x8x32xf32>
      %318 = arith.mulf %315, %317 : vector<2x8x32xf32>
      %319 = vector.shape_cast %299 : vector<1x32xf32> to vector<1x1x32xf32>
      %320 = vector.broadcast %319 : vector<1x1x32xf32> to vector<2x8x32xf32>
      %321 = arith.addf %318, %320 : vector<2x8x32xf32>
      %c0_205 = arith.constant 0 : index
      %c0_206 = arith.constant 0 : index
      %322 = vector.load %arg22[%c0_205, %c0_206] : memref<1x32xf32, #tpu.memory_space<vmem>>, vector<1x32xf32>
      %323 = vector.shape_cast %322 : vector<1x32xf32> to vector<1x1x32xf32>
      %324 = vector.broadcast %323 : vector<1x1x32xf32> to vector<2x8x32xf32>
      %325 = arith.mulf %321, %324 : vector<2x8x32xf32>
      %cst_207 = arith.constant dense<0.000000e+00> : vector<2x8xf32>
      %326 = vector.multi_reduction <add>, %325, %cst_207 [2] : vector<2x8x32xf32> to vector<2x8xf32>
      %c0_208 = arith.constant 0 : index
      %c0_209 = arith.constant 0 : index
      %327 = vector.load %arg23[%c0_208, %c0_209] : memref<1x1xf32, #tpu.memory_space<vmem>>, vector<1x1xf32>
      %328 = vector.extract %327[0, 0] : f32 from vector<1x1xf32>
      %329 = vector.broadcast %328 : f32 to vector<2x8xf32>
      %330 = arith.addf %326, %329 : vector<2x8xf32>
      %331 = arith.negf %330 : vector<2x8xf32>
      %332 = math.exp %331 : vector<2x8xf32>
      %cst_210 = arith.constant 1.000000e+00 : f32
      %333 = vector.broadcast %cst_210 : f32 to vector<2x8xf32>
      %334 = arith.addf %333, %332 : vector<2x8xf32>
      %335 = arith.divf %333, %334 : vector<2x8xf32>
      %336 = vector.shape_cast %335 : vector<2x8xf32> to vector<2x1x8xf32>
      %337 = arith.mulf %336, %4 : vector<2x1x8xf32>
      %c0_211 = arith.constant 0 : index
      %c0_212 = arith.constant 0 : index
      %c0_213 = arith.constant 0 : index
      %338 = vector.load %arg24[%c0_211, %c0_212, %c0_213] : memref<2x1x8xf32, #tpu.memory_space<vmem>>, vector<2x1x8xf32>
      tpu.vector_store %arg24[%c0_211, %c0_212, %c0_213], %337 {strides = array<i32>} : memref<2x1x8xf32, #tpu.memory_space<vmem>>, vector<2x1x8xf32>,
    } else {
    }
    return
  }
  func.func @transform_0(%arg0: i32, %arg1: i32) -> (i32, i32, i32) {
    %c0_i32 = arith.constant 0 : i32
    %c0_i32_0 = arith.constant 0 : i32
    %c0_i32_1 = arith.constant 0 : i32
    return %arg0, %c0_i32, %c0_i32_0 : i32, i32, i32
  }
  func.func @transform_1(%arg0: i32, %arg1: i32) -> (i32, i32, i32) {
    %c0_i32 = arith.constant 0 : i32
    %c0_i32_0 = arith.constant 0 : i32
    %c0_i32_1 = arith.constant 0 : i32
    return %arg0, %c0_i32, %c0_i32_0 : i32, i32, i32
  }
  func.func @transform_2(%arg0: i32, %arg1: i32) -> (i32, i32, i32) {
    %c0_i32 = arith.constant 0 : i32
    %c0_i32_0 = arith.constant 0 : i32
    %c0_i32_1 = arith.constant 0 : i32
    return %arg1, %c0_i32, %c0_i32_0 : i32, i32, i32
  }
  func.func @transform_3(%arg0: i32, %arg1: i32) -> (i32, i32, i32) {
    %c0_i32 = arith.constant 0 : i32
    %c0_i32_0 = arith.constant 0 : i32
    %c0_i32_1 = arith.constant 0 : i32
    return %arg1, %c0_i32, %c0_i32_0 : i32, i32, i32
  }
  func.func @transform_4(%arg0: i32, %arg1: i32) -> (i32, i32, i32, i32) {
    %c0_i32 = arith.constant 0 : i32
    %c0_i32_0 = arith.constant 0 : i32
    %c0_i32_1 = arith.constant 0 : i32
    %c0_i32_2 = arith.constant 0 : i32
    return %arg1, %c0_i32, %c0_i32_0, %c0_i32_1 : i32, i32, i32, i32
  }
  func.func @transform_5(%arg0: i32, %arg1: i32) -> (i32, i32, i32, i32) {
    %c0_i32 = arith.constant 0 : i32
    %c0_i32_0 = arith.constant 0 : i32
    %c0_i32_1 = arith.constant 0 : i32
    %c0_i32_2 = arith.constant 0 : i32
    return %arg1, %c0_i32, %c0_i32_0, %c0_i32_1 : i32, i32, i32, i32
  }
  func.func @transform_6(%arg0: i32, %arg1: i32) -> (i32, i32, i32, i32) {
    %c0_i32 = arith.constant 0 : i32
    %c0_i32_0 = arith.constant 0 : i32
    %c0_i32_1 = arith.constant 0 : i32
    %c0_i32_2 = arith.constant 0 : i32
    return %arg1, %c0_i32, %c0_i32_0, %c0_i32_1 : i32, i32, i32, i32
  }
  func.func @transform_7(%arg0: i32, %arg1: i32) -> (i32, i32, i32, i32) {
    %c0_i32 = arith.constant 0 : i32
    %c0_i32_0 = arith.constant 0 : i32
    %c0_i32_1 = arith.constant 0 : i32
    %c0_i32_2 = arith.constant 0 : i32
    return %arg1, %c0_i32, %c0_i32_0, %c0_i32_1 : i32, i32, i32, i32
  }
  func.func @transform_8(%arg0: i32, %arg1: i32) -> (i32, i32, i32, i32) {
    %c0_i32 = arith.constant 0 : i32
    %c0_i32_0 = arith.constant 0 : i32
    %c0_i32_1 = arith.constant 0 : i32
    %c0_i32_2 = arith.constant 0 : i32
    return %arg1, %c0_i32, %c0_i32_0, %c0_i32_1 : i32, i32, i32, i32
  }
  func.func @transform_9(%arg0: i32, %arg1: i32) -> (i32, i32, i32, i32) {
    %c0_i32 = arith.constant 0 : i32
    %c0_i32_0 = arith.constant 0 : i32
    %c0_i32_1 = arith.constant 0 : i32
    %c0_i32_2 = arith.constant 0 : i32
    return %arg1, %c0_i32, %c0_i32_0, %c0_i32_1 : i32, i32, i32, i32
  }
  func.func @transform_10(%arg0: i32, %arg1: i32) -> (i32, i32, i32, i32) {
    %c0_i32 = arith.constant 0 : i32
    %c0_i32_0 = arith.constant 0 : i32
    %c0_i32_1 = arith.constant 0 : i32
    %c0_i32_2 = arith.constant 0 : i32
    return %arg1, %c0_i32, %c0_i32_0, %c0_i32_1 : i32, i32, i32, i32
  }
  func.func @transform_11(%arg0: i32, %arg1: i32) -> (i32, i32, i32) {
    %c0_i32 = arith.constant 0 : i32
    %c0_i32_0 = arith.constant 0 : i32
    %c0_i32_1 = arith.constant 0 : i32
    return %arg1, %c0_i32, %c0_i32_0 : i32, i32, i32
  }
  func.func @transform_12(%arg0: i32, %arg1: i32) -> (i32, i32, i32) {
    %c0_i32 = arith.constant 0 : i32
    %c0_i32_0 = arith.constant 0 : i32
    %c0_i32_1 = arith.constant 0 : i32
    return %arg1, %c0_i32, %c0_i32_0 : i32, i32, i32
  }
  func.func @transform_13(%arg0: i32, %arg1: i32) -> (i32, i32, i32) {
    %c0_i32 = arith.constant 0 : i32
    %c0_i32_0 = arith.constant 0 : i32
    %c0_i32_1 = arith.constant 0 : i32
    return %arg1, %c0_i32, %c0_i32_0 : i32, i32, i32
  }
  func.func @transform_14(%arg0: i32, %arg1: i32) -> (i32, i32, i32) {
    %c0_i32 = arith.constant 0 : i32
    %c0_i32_0 = arith.constant 0 : i32
    %c0_i32_1 = arith.constant 0 : i32
    return %arg1, %c0_i32, %c0_i32_0 : i32, i32, i32
  }
  func.func @transform_15(%arg0: i32, %arg1: i32) -> (i32, i32, i32) {
    %c0_i32 = arith.constant 0 : i32
    %c0_i32_0 = arith.constant 0 : i32
    %c0_i32_1 = arith.constant 0 : i32
    return %arg1, %c0_i32, %c0_i32_0 : i32, i32, i32
  }
  func.func @transform_16(%arg0: i32, %arg1: i32) -> (i32, i32, i32) {
    %c0_i32 = arith.constant 0 : i32
    %c0_i32_0 = arith.constant 0 : i32
    %c0_i32_1 = arith.constant 0 : i32
    return %arg1, %c0_i32, %c0_i32_0 : i32, i32, i32
  }
  func.func @transform_17(%arg0: i32, %arg1: i32) -> (i32, i32, i32) {
    %c0_i32 = arith.constant 0 : i32
    %c0_i32_0 = arith.constant 0 : i32
    %c0_i32_1 = arith.constant 0 : i32
    return %arg1, %c0_i32, %c0_i32_0 : i32, i32, i32
  }
  func.func @transform_18(%arg0: i32, %arg1: i32) -> (i32, i32) {
    %c0_i32 = arith.constant 0 : i32
    %c0_i32_0 = arith.constant 0 : i32
    %c0_i32_1 = arith.constant 0 : i32
    return %c0_i32, %c0_i32_0 : i32, i32
  }
  func.func @transform_19(%arg0: i32, %arg1: i32) -> (i32, i32) {
    %c0_i32 = arith.constant 0 : i32
    %c0_i32_0 = arith.constant 0 : i32
    %c0_i32_1 = arith.constant 0 : i32
    return %c0_i32, %c0_i32_0 : i32, i32
  }
  func.func @transform_20(%arg0: i32, %arg1: i32) -> (i32, i32) {
    %c0_i32 = arith.constant 0 : i32
    %c0_i32_0 = arith.constant 0 : i32
    %c0_i32_1 = arith.constant 0 : i32
    return %c0_i32, %c0_i32_0 : i32, i32
  }
  func.func @transform_21(%arg0: i32, %arg1: i32) -> (i32, i32) {
    %c0_i32 = arith.constant 0 : i32
    %c0_i32_0 = arith.constant 0 : i32
    %c0_i32_1 = arith.constant 0 : i32
    return %c0_i32, %c0_i32_0 : i32, i32
  }
  func.func @transform_22(%arg0: i32, %arg1: i32) -> (i32, i32, i32) {
    %c0_i32 = arith.constant 0 : i32
    %c0_i32_0 = arith.constant 0 : i32
    %c0_i32_1 = arith.constant 0 : i32
    return %arg0, %c0_i32, %c0_i32_0 : i32, i32, i32
  }
}

</mosaic_0001>

<bundles_post_ra>
// kernel: bertsum_forward.1
= control target key start
LH: loop header
LB: loop body
LE: loop exit
PB: predicated region body
PF: predicated region fallthrough
CT: control target
= control target key end

     0   :  { %s3572_s0 = inlined_call_operand.vmem [shape: f32[2,8,32], index: 0, kind: input, shape index: {}]   ;;  %s3573_s1 = inlined_call_operand.vmem [shape: f32[2,1,8], index: 1, kind: input, shape index: {}]   ;;  %s3574_s2 = inlined_call_operand.vmem [shape: f32[2,1,32], index: 2, kind: input, shape index: {}]   ;;  %s3575_s3 = inlined_call_operand.vmem [shape: f32[2,1,32], index: 3, kind: input, shape index: {}]   ;;  %s3576_s4 = inlined_call_operand.vmem [shape: bf16[2,4,32,8], index: 4, kind: input, shape index: {}]   ;;  %s3577_s5 = inlined_call_operand.vmem [shape: f32[2,4,1,8], index: 5, kind: input, shape index: {}]   ;;  %s3578_s6 = inlined_call_operand.vmem [shape: bf16[2,4,32,8], index: 6, kind: input, shape index: {}]   ;;  %s3579_s7 = inlined_call_operand.vmem [shape: f32[2,4,1,8], index: 7, kind: input, shape index: {}]   ;;  %s3580_s8 = inlined_call_operand.vmem [shape: bf16[2,4,32,8], index: 8, kind: input, shape index: {}]   ;;  %s3581_s9 = inlined_call_operand.vmem [shape: f32[2,4,1,8], index: 9, kind: input, shape index: {}]   ;;  %s3582_s10 = inlined_call_operand.vmem [shape: bf16[2,4,8,32], index: 10, kind: input, shape index: {}]   ;;  %s3583_s11 = inlined_call_operand.vmem [shape: f32[2,1,32], index: 11, kind: input, shape index: {}]   ;;  %s3584_s12 = inlined_call_operand.vmem [shape: f32[2,1,32], index: 12, kind: input, shape index: {}]   ;;  %s3585_s13 = inlined_call_operand.vmem [shape: f32[2,1,32], index: 13, kind: input, shape index: {}]   ;;  %s3586_s14 = inlined_call_operand.vmem [shape: bf16[2,32,64], index: 14, kind: input, shape index: {}]   ;;  %s3587_s15 = inlined_call_operand.vmem [shape: f32[2,1,64], index: 15, kind: input, shape index: {}]   ;;  %s3588_s16 = inlined_call_operand.vmem [shape: bf16[2,64,32], index: 16, kind: input, shape index: {}]   ;;  %s3589_s17 = inlined_call_operand.vmem [shape: f32[2,1,32], index: 17, kind: input, shape index: {}]   ;;  %s3590_s18 = inlined_call_operand.vmem [shape: f32[1,32], index: 18, kind: input, shape index: {}]   ;;  %s3591_s19 = inlined_call_operand.vmem [shape: f32[1,32], index: 19, kind: input, shape index: {}]   ;;  %s3592_s20 = inlined_call_operand.vmem [shape: f32[1,32], index: 20, kind: input, shape index: {}]   ;;  %s3593_s21 = inlined_call_operand.<no memory space> [shape: f32[1,1], index: 21, kind: input, shape index: {}]   ;;  %s3594_s22 = inlined_call_operand.hbm [shape: f32[2,1,8], index: 22, kind: output, shape index: {}]  }
   0x1   :  { %3601 = sst [smem:[#allocation12_spill]] %s3572_s0  ;;  %v27_v0 = vstv %s3593_s21 }
   0x2   :  { %3602 = sst [smem:[#allocation13_spill]] %s3573_s1  ;;  %28 = vst [vmem:[#allocation3] sm:$0x1] %v27_v0 }
   0x3   :  { %3603 = sst [smem:[#allocation14_spill]] %s3574_s2 }
   0x4   :  { %3604 = sst [smem:[#allocation15_spill]] %s3575_s3 }
   0x5   :  { %3605 = sst [smem:[#allocation16_spill]] %s3576_s4 }
   0x6   :  { %3606 = sst [smem:[#allocation17_spill]] %s3577_s5 }
   0x7   :  { %3607 = sst [smem:[#allocation18_spill]] %s3578_s6 }
   0x8   :  { %3608 = sst [smem:[#allocation19_spill]] %s3579_s7 }
   0x9   :  { %3609 = sst [smem:[#allocation20_spill]] %s3580_s8 }
   0xa   :  { %3610 = sst [smem:[#allocation21_spill]] %s3581_s9 }
   0xb   :  { %3611 = sst [smem:[#allocation22_spill]] %s3582_s10 }
   0xc   :  { %3612 = sst [smem:[#allocation23_spill]] %s3590_s18 }
   0xd   :  { %3613 = sst [smem:[#allocation24_spill]] %s3591_s19 }
   0xe   :  { %3614 = sst [smem:[#allocation25_spill]] %s3592_s20 }
   0xf   :  { %3615 = sst [smem:[#allocation26_spill]] %s3594_s22 }
  0x10   :  { %29 = vsyncpa [#allocation5], 0  ;;  %s3183_s29 = smov 0   ;;  %s3185_s30 = smov 0  }
  0x11   :  { %s3187_s4 = smov 0  }
  0x12 LB: > { %3616 = sst [smem:[#allocation7_spill]] %s3054_s30  ;;  %s44_s0 = sadd.s32 1, %s3054_s30  ;;  %s3058_s4 = sphi %s3187_s4, %s35_s4   ;;  %s3054_s30 = sphi %s3185_s30, %s3647_s30   ;;  %s3050_s29 = sphi %s3183_s29, %s3646_s29  }
  0x13   : > { %3617 = sst [smem:[#allocation8_spill]] %s3058_s4  ;;  %p45_p0 = scmp.ge.s32.totalorder %s44_s0, 2 }
  0x14   : > { %p2621_p1 = scmp.ge.s32.totalorder %s3058_s4, 1  ;;  %p781_p2 = scmp.lt.s32.totalorder %s3058_s4, 3 }
  0x15   : > { %s3649_s0 = smov (%p45_p0, %s44_s0), 0 }
  0x16   : > { %3618 = sst [smem:[#allocation9_spill]] %s3649_s0  ;;  %p782_p3 = pnand %p2621_p1, %p781_p2 }
  0x18   : > { %785 = sbr.rel (%p782_p3) target bundleno = 3748 (0xea4), region = 108 }
  0x1d   : > { %p916_p4 = scmp.lt.s32.totalorder %s3050_s29, 1  ;;  %p981_p5 = scmp.eq.s32.totalorder %s3050_s29, 0 }
  0x1e   : > { %s3621_s30 = sld [smem:[#allocation16_spill]]  ;;  %p2637_p6 = scmp.ne.s32.totalorder %s3050_s29, 0 }
  0x1f   : > { %s3207_s23 = scalar_select %p916_p4, %s3050_s29, 1 }
  0x20   : > { %s3623_s4 = sld [smem:[#allocation17_spill]] }
  0x21   : > { %s2847_s3 = sshll.u32 %s3207_s23, 6  ;;  %s2624_s28 = sshll.u32 %s3207_s23, 2 }
  0x22   : > { %s3625_s19 = sld [smem:[#allocation18_spill]]  ;;  %s959_s18 = scalar_lea.vmem %s3584_s12, %s3207_s23 }
  0x23   : > { %s3626_s7 = sld [smem:[#allocation19_spill]] }
  0x24   : > { %s3222_s1 = scalar_lea.vmem %s3621_s30, %s2847_s3  ;;  %s3627_s8 = sld [smem:[#allocation20_spill]] }
  0x25   : > { %3622 = sst [smem:[#allocation10_spill]] %s3222_s1  ;;  %s962_s1 = scalar_lea.vmem %s3585_s13, %s3207_s23 }
  0x26   : > { %s3227_s20 = scalar_lea.vmem %s3623_s4, %s2624_s28  ;;  %s3628_s9 = sld [smem:[#allocation21_spill]] }
  0x27   : > { %3624 = sst [smem:[#allocation11_spill]] %s3227_s20  ;;  %s2850_s4 = sshll.u32 %s3207_s23, 4 }
  0x28   : > { %s3232_s25 = scalar_lea.vmem %s3625_s19, %s2847_s3  ;;  %s3629_s10 = sld [smem:[#allocation22_spill]] }
  0x29   : > { %s3237_s27 = scalar_lea.vmem %s3626_s7, %s2624_s28  ;;  %s970_s19 = scalar_lea.vmem %s3587_s15, %s3207_s23 }
  0x2a   : > { %s3242_s30 = scalar_lea.vmem %s3627_s8, %s2847_s3  ;;  %s3270_s8 = scalar_lea.vmem %s3586_s14, %s2850_s4 }
  0x2b   : > { %s2852_s20 = sshll.u32 %s3207_s23, 5  ;;  %s978_s3 = scalar_lea.vmem %s3589_s17, %s3207_s23 }
  0x2c   : > { %s3247_s22 = scalar_lea.vmem %s3628_s9, %s2624_s28  ;;  %984 = sbr.rel (%p2637_p6) target bundleno = 54 (0x36), region = 112 }
  0x2d   : > { %s3630_s28 = sld [smem:[#allocation12_spill]] (!%p2637_p6) }
  0x2e   : > { %s3257_s26 = scalar_lea.vmem %s3629_s10, %s2850_s4  ;;  %s3280_s10 = scalar_lea.vmem %s3588_s16, %s2852_s20 }
  0x31   : > { %vm987_vm0 = vcmask 261120  }
  0x33   : > { %v985_v1 = vld [vmem:[%s3630_s28] sm:$0xff]  ;;  %v986_v2 = vld [vmem:[%s3630_s28 + $0x8] sm:$0xff] }
  0x34   : > { %988 = vst.msk [vmem:[#allocation2] sm:$0xff] %vm987_vm0, %v985_v1 }
  0x35   : > { %989 = vst.msk [vmem:[#allocation2 + $0x8] sm:$0xff] %vm987_vm0, %v986_v2 }
  0x36 PF: > { %vm996_vm1 = vcmask 261120   ;;  %v3060_v7 = vmov 32.0   ;;  %s3631_s9 = sld [smem:[#allocation10_spill]]  ;;  %v2856_v28 = vld [vmem:[%s3232_s25 + $0x8] sm:$0xff]  ;;  %v2855_v31 = vld [vmem:[%s3232_s25] sm:$0xff]  ;;  %vm1191_vm10 = vcmask 64512  }
  0x37   : > { %2939 = vrcp.f32 %v3060_v7  ;;  %v2858_v29 = vld [vmem:[%s3242_s30 + $0x8] sm:$0xff]  ;;  %1137 = vmatpush.bf16.msra.mxu1 %v2856_v28  ;;  %v2857_v32 = vld [vmem:[%s3242_s30] sm:$0xff]  ;;  %s3632_s24 = sld [smem:[#allocation14_spill]]  ;;  %vm1257_vm11 = vcmask 1043456   ;;  %p2840_p7 = scmp.ne.s32.totalorder %s3050_s29, 1 }
  0x38   : > { %1171 = vmatpush.bf16.msra.mxu2 %v2858_v29  ;;  %s1058_s2 = scalar_select %p981_p5, 1, 0  ;;  %v2923_v2 = vld [vmem:[%s3237_s27] ss:$0 sm:$0xff]  ;;  %v2861_v29 = vld [vmem:[%s3232_s25 + $0x10] sm:$0xff] }
  0x39   : > { %s3634_s0 = sld [smem:[#allocation15_spill]] }
  0x3a   : > { %v1059_v52 = vstv %s1058_s2  ;;  %s3636_s6 = sld [smem:[#allocation11_spill]] }
  0x3b   : > { %v3293_v3 = vld [vmem:[#allocation2] sm:$0xff]  ;;  %1138 = vmatpush.bf16.msra.mxu1 %v2855_v31  ;;  %vm1060_vm9 = vcmp.eq.s32.totalorder %v1059_v52, 1 }
  0x3c   : > { %v997_v4 = vsel %vm996_vm1, %v3293_v3, 0.0  ;;  %v3297_v5 = vld [vmem:[#allocation2 + $0x8] sm:$0xff]  ;;  %v2853_v30 = vld [vmem:[%s3631_s9] sm:$0xff]  ;;  %1172 = vmatpush.bf16.msra.mxu2 %v2857_v32 }
  0x3d   : > { %998 = vadd.xlane.f32.xlu0 %v997_v4  ;;  %v1000_v6 = vsel %vm996_vm1, %v3297_v5, 0.0  ;;  %v2940_v8 = vpop.eup %2939  ;;  %v2854_v27 = vld [vmem:[%s3631_s9 + $0x8] sm:$0xff]  ;;  %s3633_s7 = scalar_lea.vmem %s3632_s24, %s3207_s23  ;;  %s3641_s24 = sld [smem:[#allocation25_spill]] (!%p2840_p7) }
  0x3e   : > { %v1004_v9 = vmul.f32 32.0, %v2940_v8  ;;  %vm1008_vm2 = vweird.f32 %v2940_v8  ;;  %1103 = vmatpush.bf16.msra.mxu0 %v2854_v27  ;;  %v2920_v44 = vld [vmem:[%s3633_s7] ss:$0 sm:$0xff]  ;;  %s3637_s7 = sld [smem:[#allocation13_spill]] }
  0x3f   : > { %s3635_s5 = scalar_lea.vmem %s3634_s0, %s3207_s23 }
  0x40   : > { %v1005_v10 = vsub.f32 1.0, %v1004_v9  ;;  %v2921_v49 = vld [vmem:[%s3635_s5] ss:$0 sm:$0xff]  ;;  %s3640_s5 = sld [smem:[#allocation24_spill]] (!%p2840_p7) }
  0x42   : > { %v1006_v11 = vmul.f32 %v2940_v8, %v1005_v10  ;;  %1104 = vmatpush.bf16.msra.mxu0 %v2853_v30  ;;  %v2860_v10 = vld [vmem:[%s3631_s9 + $0x18] sm:$0xff] }
  0x44   : > { %v1007_v12 = vadd.f32 %v2940_v8, %v1006_v11  ;;  %v2924_v11 = vld [vmem:[%s3247_s22] ss:$0 sm:$0xff] }
  0x45   : > { %1001 = vadd.xlane.f32.xlu0 %v1000_v6 }
  0x46   : > { %v3301_v13 = vsel %vm1008_vm2, %v2940_v8, %v1007_v12  ;;  %v2922_v8 = vld [vmem:[%s3636_s6] ss:$0 sm:$0xff] }
  0xb0   : > { %v999_v14 = vpop.xlane.xlu0 %998 }
  0xb1   : > { %v1010_v15 = vmul.f32 %v3301_v13, %v999_v14 }
  0xb3   : > { %v1012_v16 = vsub.f32 %v3293_v3, %v1010_v15 }
  0xb5   : > { %v1014_v17 = vmul.f32 %v1012_v16, %v1012_v16 }
  0xb7   : > { %v1016_v18 = vsel %vm996_vm1, %v1014_v17, 0.0 }
  0xb8   : > { %1017 = vadd.xlane.f32.xlu1 %v1016_v18  ;;  %v1002_v19 = vpop.xlane.xlu0 %1001 }
  0xb9   : > { %v1011_v20 = vmul.f32 %v3301_v13, %v1002_v19 }
  0xbb   : > { %v1013_v21 = vsub.f32 %v3297_v5, %v1011_v20 }
  0xbd   : > { %v1015_v22 = vmul.f32 %v1013_v21, %v1013_v21 }
  0xbf   : > { %v1019_v23 = vsel %vm996_vm1, %v1015_v22, 0.0 }
  0xc0   : > { %1020 = vadd.xlane.f32.xlu1 %v1019_v23  ;;  %v2862_v23 = vld [vmem:[%s3232_s25 + $0x18] sm:$0xff] }
 0x12b   : > { %v1018_v24 = vpop.xlane.xlu1 %1017 }
 0x12c   : > { %v1022_v25 = vmul.f32 %v1018_v24, %v3301_v13 }
 0x12e   : > { %v1024_v26 = vadd.f32 1e-12, %v1022_v25 }
 0x130   : > { %2941 = vrsqrt.f32 %v1024_v26  ;;  %vm1032_vm4 = vweird.f32 %v1024_v26 }
 0x133   : > { %v1021_v33 = vpop.xlane.xlu1 %1020 }
 0x134   : > { %v1023_v34 = vmul.f32 %v1021_v33, %v3301_v13 }
 0x136   : > { %v2942_v35 = vpop.eup %2941  ;;  %v1025_v36 = vadd.f32 1e-12, %v1023_v34  ;;  %v3359_v34 = vld [vmem:[%s3637_s7] sm:$0x1] }
 0x137   : > { %v1027_v37 = vmul.f32 %v2942_v35, %v1024_v26  ;;  %vm1033_vm3 = vweird.f32 %v2942_v35 }
 0x138   : > { %2943 = vrsqrt.f32 %v1025_v36  ;;  %vm1034_vm5 = vmor %vm1032_vm4, %vm1033_vm3  ;;  %vm1042_vm7 = vweird.f32 %v1025_v36  ;;  %vm2193_vm3 = vcmask 523264  }
 0x139   : > { %v1028_v38 = vmul.f32 %v2942_v35, %v1027_v37 }
 0x13b   : > { %v1029_v39 = vmul.f32 0.5, %v1028_v38 }
 0x13d   : > { %v1030_v40 = vsub.f32 1.5, %v1029_v39 }
 0x13e   : > { %v2944_v41 = vpop.eup %2943 }
 0x13f   : > { %v1031_v42 = vmul.f32 %v2942_v35, %v1030_v40  ;;  %v1037_v43 = vmul.f32 %v2944_v41, %v1025_v36  ;;  %vm1043_vm6 = vweird.f32 %v2944_v41  ;;  %v1065_v36 = vsub.f32 1.0, %v3359_v34 }
 0x140   : > { %vm1044_vm8 = vmor %vm1042_vm7, %vm1043_vm6 }
 0x141   : > { %v1035_v45 = vsel %vm1034_vm5, %v2942_v35, %v1031_v42  ;;  %v1038_v46 = vmul.f32 %v2944_v41, %v1037_v43  ;;  %v3364_v35 = vld [vmem:[%s3637_s7 + $0x1] sm:$0x1]  ;;  %v1067_v38 = vmul.f32 -1e+18, %v1065_v36 }
 0x142   : > { %v1046_v47 = vmul.f32 %v1035_v45, %v1012_v16  ;;  %v2859_v16 = vld [vmem:[%s3631_s9 + $0x10] sm:$0xff]  ;;  %v1066_v37 = vsub.f32 1.0, %v3364_v35 }
 0x143   : > { %v1039_v48 = vmul.f32 0.5, %v1038_v46  ;;  %v3368_v40 = vperm.slane %v1067_v38, 0 }
 0x144   : > { %v1051_v50 = vmul.f32 %v2920_v44, %v1046_v47  ;;  %v1068_v39 = vmul.f32 -1e+18, %v1066_v37  ;;  %v1294_v37 = vld [vmem:[%s3257_s26] sm:$0xf] }
 0x145   : > { %v1040_v51 = vsub.f32 1.5, %v1039_v48  ;;  %v1536_v38 = vsel %vm1257_vm11, %v1294_v37, 0 }
 0x146   : > { %v1056_v54 = vadd.f32 %v2921_v49, %v1051_v50  ;;  %v2925_v50 = vld [vmem:[%s3636_s6 + $0x1] ss:$0 sm:$0xff] }
 0x147   : > { %v1041_v53 = vmul.f32 %v2944_v41, %v1040_v51  ;;  %v2926_v51 = vld [vmem:[%s3237_s27 + $0x1] ss:$0 sm:$0xff] }
 0x148   : > { %v1061_v57 = vsel %vm1060_vm9, %v3293_v3, %v1056_v54 }
 0x149   : > { %v1045_v55 = vsel %vm1044_vm8, %v2944_v41, %v1041_v53  ;;  %v1063_v60 = vpack.c.bf16 %v1061_v57, %v1061_v57  ;;  %v3370_v41 = vperm.slane %v1068_v39, 0 }
 0x14a   : > { %v1047_v56 = vmul.f32 %v1045_v55, %v1013_v21 }
 0x14b   : > { %v1079_v63 = vunpack.c.l.b16 %v1063_v60 }
 0x14c   : > { %v1052_v58 = vmul.f32 %v2920_v44, %v1047_v56 }
 0x14e   : > { %v1057_v59 = vadd.f32 %v2921_v49, %v1052_v58 }
 0x150   : > { %v1062_v61 = vsel %vm1060_vm9, %v3297_v5, %v1057_v59 }
 0x151   : > { %v1064_v62 = vpack.c.bf16 %v1062_v61, %v1062_v61 }
 0x153   : > { %v1080_v0 = vunpack.c.l.b16 %v1064_v62 }
 0x155   : > { %v3331_v1 = vpack.c.b16 %v1080_v0, %v1079_v63 }
 0x157   : > { %2646 = vmatmul.msk.bf16.vlgmr.msra.gmra.mxu0 %vm996_vm1, %v3331_v1  ;;  %2655 = vmatmul.msk.bf16.vlgmr.msra.gmra.mxu1 %vm996_vm1, %v3331_v1 }
 0x158   : > { %2664 = vmatmul.msk.bf16.vlgmr.msra.gmra.mxu2 %vm996_vm1, %v3331_v1 }
 0x1d4   : > { %v1140_v4 = vpop.f32.mrf.mxu1  ;;  %v1106_v7 = vpop.f32.mrf.mxu0 }
 0x1d5   : > { %v1141_v6 = vadd.f32 %v2923_v2, %v1140_v4  ;;  %v1107_v14 = vadd.f32 %v2922_v8, %v1106_v7 }
 0x1d7   : > { %v1181_v9 = vpack.c.bf16 %v1141_v6, %v1141_v6  ;;  %v1179_v21 = vpack.c.bf16 %v1107_v14, %v1107_v14 }
 0x1d9   : > { %v1196_v12 = vsel %vm1191_vm10, %v1181_v9, 0 }
 0x1da   : > { %1205 = vmatpush.bf16.xpose.msra.mxu3 %v1196_v12 }
 0x1db   : > { %v1174_v15 = vpop.f32.mrf.mxu2 }
 0x1dc   : > { %v1175_v17 = vadd.f32 %v2924_v11, %v1174_v15  ;;  %v1142_v18 = vpop.f32.mrf.mxu1  ;;  %v1108_v24 = vpop.f32.mrf.mxu0 }
 0x1dd   : > { %v1143_v19 = vadd.f32 %v2923_v2, %v1142_v18  ;;  %v1109_v27 = vadd.f32 %v2922_v8, %v1108_v24 }
 0x1de   : > { %v1183_v20 = vpack.c.bf16 %v1175_v17, %v1175_v17 }
 0x1df   : > { %v1182_v22 = vpack.c.bf16 %v1143_v19, %v1143_v19  ;;  %v1180_v32 = vpack.c.bf16 %v1109_v27, %v1109_v27  ;;  %v2864_v19 = vld [vmem:[%s3242_s30 + $0x18] sm:$0xff] }
 0x1e0   : > { %v1259_v25 = vsel %vm1257_vm11, %v1183_v20, 0  ;;  %v2863_v20 = vld [vmem:[%s3242_s30 + $0x10] sm:$0xff] }
 0x1e1   : > { %1268 = vmatpush.bf16.msrb.mxu1 %v1259_v25  ;;  %2665 = vmatmul.msk.bf16.vlgmr.msra.gmra.mxu3 %vm1191_vm10, %v1179_v21  ;;  %v1215_v26 = vsel %vm1191_vm10, %v1182_v22, 0 }
 0x1e2   : > { %1323 = vmatpush.bf16.msrb.mxu3 %v2860_v10  ;;  %1224 = vmatpush.bf16.xpose.msrb.mxu0 %v1215_v26 }
 0x1e3   : > { %v1176_v28 = vpop.f32.mrf.mxu2 }
 0x1e4   : > { %v1177_v30 = vadd.f32 %v2924_v11, %v1176_v28 }
 0x1e5   : > { %1395 = vmatpush.bf16.msra.mxu1 %v2864_v19 }
 0x1e6   : > { %1324 = vmatpush.bf16.msrb.mxu3 %v2859_v16  ;;  %v1184_v31 = vpack.c.bf16 %v1177_v30, %v1177_v30 }
 0x1e8   : > { %v1278_v33 = vsel %vm1257_vm11, %v1184_v31, 0 }
 0x1e9   : > { %1287 = vmatpush.bf16.msrb.mxu2 %v1278_v33  ;;  %2666 = vmatmul.msk.bf16.vlgmr.msrb.gmra.mxu0 %vm1191_vm10, %v1180_v32 }
 0x1ea   : > { %1359 = vmatpush.bf16.msra.mxu0 %v2862_v23  ;;  %1396 = vmatpush.bf16.msra.mxu1 %v2863_v20 }
 0x1ee   : > { %1360 = vmatpush.bf16.msra.mxu0 %v2861_v29 }
 0x1f1   : > { %2682 = vmatmul.msk.bf16.vlgmr.msrb.gmra.mxu3 %vm996_vm1, %v3331_v1 }
 0x1f9   : > { %2696 = vmatmul.msk.bf16.vlgmr.msra.gmra.mxu0 %vm996_vm1, %v3331_v1 }
 0x264   : > { %v1207_v42 = vpop.f32.mrf.mxu3 }
 0x265   : > { %v1208_v43 = vadd.f32 %v1207_v42, %v3368_v40 }
 0x266   : > { %v1226_v44 = vpop.f32.mrf.mxu0 }
 0x267   : > { %v1227_v45 = vadd.f32 %v1226_v44, %v3370_v41  ;;  %v1230_v46 = vsel %vm1191_vm10, %v1208_v43, -inf }
 0x268   : > { %1231 = vmax.xlane.f32.xlu0 %v1230_v46 }
 0x269   : > { %v1233_v47 = vsel %vm1191_vm10, %v1227_v45, -inf }
 0x26a   : > { %1234 = vmax.xlane.f32.xlu2 %v1233_v47 }
 0x26c   : > { %v1209_v48 = vpop.f32.mrf.mxu3 }
 0x26e   : > { %v1228_v49 = vpop.f32.mrf.mxu0 }
 0x274   : > { %v1326_v52 = vpop.f32.mrf.mxu3 }
 0x275   : > { %v1327_v53 = vadd.f32 %v2925_v50, %v1326_v52 }
 0x276   : > { %v1362_v54 = vpop.f32.mrf.mxu0 }
 0x277   : > { %v1363_v55 = vadd.f32 %v2926_v51, %v1362_v54  ;;  %v1403_v29 = vpack.c.bf16 %v1327_v53, %v1327_v53 }
 0x279   : > { %v1405_v56 = vpack.c.bf16 %v1363_v55, %v1363_v55 }
 0x27b   : > { %v1413_v57 = vsel %vm1191_vm10, %v1405_v56, 0 }
 0x27c   : > { %1422 = vmatpush.bf16.xpose.msra.mxu2 %v1413_v57  ;;  %v1328_v61 = vpop.f32.mrf.mxu3  ;;  %v2868_v57 = vld [vmem:[%s3232_s25 + $0x28] sm:$0xff] }
 0x27d   : > { %v1329_v63 = vadd.f32 %v2925_v50, %v1328_v61 }
 0x27e   : > { %v1364_v58 = vpop.f32.mrf.mxu0 }
 0x27f   : > { %v1365_v59 = vadd.f32 %v2926_v51, %v1364_v58  ;;  %v1404_v0 = vpack.c.bf16 %v1329_v63, %v1329_v63 }
 0x281   : > { %v1406_v60 = vpack.c.bf16 %v1365_v59, %v1365_v59  ;;  %v2867_v59 = vld [vmem:[%s3232_s25 + $0x20] sm:$0xff] }
 0x283   : > { %v1432_v62 = vsel %vm1191_vm10, %v1406_v60, 0 }
 0x284   : > { %1441 = vmatpush.bf16.xpose.msra.mxu3 %v1432_v62 }
 0x28b   : > { %2712 = vmatmul.msk.bf16.vlgmr.msra.gmra.mxu3 %vm1191_vm10, %v1404_v0 }
 0x28c   : > { %1545 = vmatpush.bf16.msrb.mxu3 %v1536_v38  ;;  %v2929_v38 = vld [vmem:[%s3636_s6 + $0x2] ss:$0 sm:$0xff] }
 0x2db   : > { %v1232_v2 = vpop.xlane.xlu0 %1231 }
 0x2dc   : > { %v1236_v4 = vsub.f32 %v1208_v43, %v1232_v2 }
 0x2dd   : > { %v1235_v6 = vpop.xlane.xlu2 %1234 }
 0x2de   : > { %v1238_v7 = vmul.f32 1.442695, %v1236_v4  ;;  %v1237_v8 = vsub.f32 %v1227_v45, %v1235_v6  ;;  %v2927_v45 = vld [vmem:[%s3247_s22 + $0x1] ss:$0 sm:$0xff] }
 0x2e0   : > { %2945 = vpow2.f32 %v1238_v7  ;;  %v1240_v9 = vmul.f32 1.442695, %v1237_v8 }
 0x2e2   : > { %2947 = vpow2.f32 %v1240_v9 }
 0x2e6   : > { %v2946_v10 = vpop.eup %2945 }
 0x2e7   : > { %v1242_v11 = vsel %vm1191_vm10, %v2946_v10, 0.0 }
 0x2e8   : > { %v2948_v12 = vpop.eup %2947  ;;  %1243 = vadd.xlane.f32.xlu1 %v1242_v11  ;;  %v2928_v11 = vld [vmem:[%s3237_s27 + $0x2] ss:$0 sm:$0xff] }
 0x2e9   : > { %v1245_v14 = vsel %vm1191_vm10, %v2948_v12, 0.0 }
 0x2ea   : > { %1246 = vadd.xlane.f32.xlu2 %v1245_v14 }
 0x30e   : > { %v1443_v15 = vpop.f32.mrf.mxu3 }
 0x30f   : > { %v1444_v16 = vadd.f32 %v1443_v15, %v3370_v41 }
 0x311   : > { %v1450_v17 = vsel %vm1191_vm10, %v1444_v16, -inf }
 0x312   : > { %1451 = vmax.xlane.f32.xlu2 %v1450_v17  ;;  %v2866_v17 = vld [vmem:[%s3631_s9 + $0x28] sm:$0xff] }
 0x316   : > { %v1445_v18 = vpop.f32.mrf.mxu3 }
 0x317   : > { %v2865_v18 = vld [vmem:[%s3631_s9 + $0x20] sm:$0xff] }
 0x35b   : > { %v1244_v21 = vpop.xlane.xlu1 %1243 }
 0x35c   : > { %2949 = vrcp.f32 %v1244_v21 }
 0x35d   : > { %v1247_v22 = vpop.xlane.xlu2 %1246 }
 0x35e   : > { %2951 = vrcp.f32 %v1247_v22 }
 0x362   : > { %v2950_v23 = vpop.eup %2949 }
 0x363   : > { %v1250_v24 = vmul.f32 %v2950_v23, %v2946_v10 }
 0x364   : > { %v2952_v25 = vpop.eup %2951 }
 0x365   : > { %v1251_v26 = vmul.f32 %v2952_v25, %v2948_v12  ;;  %v1252_v27 = vpack.c.bf16 %v1250_v24, %v1250_v24 }
 0x367   : > { %2667 = vmatmul.msk.bf16.vlgmr.msrb.gmra.mxu1 %vm1191_vm10, %v1252_v27  ;;  %v1253_v28 = vpack.c.bf16 %v1251_v26, %v1251_v26  ;;  %v2715_v27 = vld [vmem:[%s3257_s26 + $0x4] sm:$0xf] }
 0x369   : > { %2668 = vmatmul.msk.bf16.vlgmr.msrb.gmra.mxu2 %vm1191_vm10, %v1253_v28  ;;  %v1516_v28 = vsel %vm1257_vm11, %v2715_v27, 0 }
 0x36a   : > { %1525 = vmatpush.bf16.msrb.mxu2 %v1516_v28 }
 0x377   : > { %2710 = vmatmul.msk.bf16.vlgmr.msra.gmra.mxu1 %vm996_vm1, %v3331_v1 }
 0x379   : > { %2711 = vmatmul.msk.bf16.vlgmr.msra.gmra.mxu2 %vm1191_vm10, %v1403_v29  ;;  %v2870_v29 = vld [vmem:[%s3242_s30 + $0x28] sm:$0xff] }
 0x37a   : > { %1652 = vmatpush.bf16.msra.mxu2 %v2870_v29 }
 0x385   : > { %v1452_v30 = vpop.xlane.xlu2 %1451 }
 0x386   : > { %v1454_v31 = vsub.f32 %v1444_v16, %v1452_v30  ;;  %v2869_v30 = vld [vmem:[%s3242_s30 + $0x20] sm:$0xff] }
 0x387   : > { %1653 = vmatpush.bf16.msra.mxu2 %v2869_v30 }
 0x388   : > { %v1457_v32 = vmul.f32 1.442695, %v1454_v31  ;;  %v2872_v31 = vld [vmem:[%s3631_s9 + $0x38] sm:$0xff] }
 0x38a   : > { %2953 = vpow2.f32 %v1457_v32  ;;  %v2871_v32 = vld [vmem:[%s3631_s9 + $0x30] sm:$0xff] }
 0x390   : > { %v2954_v33 = vpop.eup %2953 }
 0x391   : > { %v1462_v36 = vsel %vm1191_vm10, %v2954_v33, 0.0 }
 0x392   : > { %1463 = vadd.xlane.f32.xlu1 %v1462_v36 }
 0x3e4   : > { %v1270_v39 = vpop.f32.mrf.mxu1 }
 0x3ec   : > { %v1272_v42 = vpop.f32.mrf.mxu1  ;;  %v1289_v43 = vpop.f32.mrf.mxu2 }
 0x3ed   : > { %v1293_v44 = vpack.c.bf16 %v1289_v43, %v1270_v39 }
 0x3ef   : > { %2717 = vmatmul.msk.bf16.vlgmr.msrb.gmra.mxu3 %vm1191_vm10, %v1293_v44 }
 0x3f4   : > { %v1291_v46 = vpop.f32.mrf.mxu2  ;;  %v1398_v47 = vpop.f32.mrf.mxu1 }
 0x3f5   : > { %v1399_v48 = vadd.f32 %v2927_v45, %v1398_v47 }
 0x3f7   : > { %v1407_v49 = vpack.c.bf16 %v1399_v48, %v1399_v48 }
 0x3f9   : > { %v1475_v50 = vsel %vm1257_vm11, %v1407_v49, 0 }
 0x3fa   : > { %1484 = vmatpush.bf16.msrb.mxu0 %v1475_v50 }
 0x3fc   : > { %v1400_v51 = vpop.f32.mrf.mxu1  ;;  %v1424_v52 = vpop.f32.mrf.mxu2 }
 0x3fd   : > { %v1401_v53 = vadd.f32 %v2927_v45, %v1400_v51  ;;  %v1425_v54 = vadd.f32 %v1424_v52, %v3368_v40  ;;  %v2930_v52 = vld [vmem:[%s3247_s22 + $0x2] ss:$0 sm:$0xff] }
 0x3fe   : > { %1580 = vmatpush.bf16.msra.mxu0 %v2866_v17 }
 0x3ff   : > { %v1408_v55 = vpack.c.bf16 %v1401_v53, %v1401_v53  ;;  %v1447_v56 = vsel %vm1191_vm10, %v1425_v54, -inf }
 0x400   : > { %1448 = vmax.xlane.f32.xlu0 %v1447_v56 }
 0x401   : > { %v1494_v58 = vsel %vm1257_vm11, %v1408_v55, 0 }
 0x402   : > { %1503 = vmatpush.bf16.msrb.mxu1 %v1494_v58  ;;  %1581 = vmatpush.bf16.msra.mxu0 %v2865_v18 }
 0x404   : > { %v1426_v60 = vpop.f32.mrf.mxu2 }
 0x405   : > { %v1464_v61 = vpop.xlane.xlu1 %1463 }
 0x406   : > { %1616 = vmatpush.bf16.msra.mxu1 %v2868_v57  ;;  %2955 = vrcp.f32 %v1464_v61 }
 0x40a   : > { %1617 = vmatpush.bf16.msra.mxu1 %v2867_v59 }
 0x40c   : > { %v2956_v62 = vpop.eup %2955 }
 0x40d   : > { %v1468_v63 = vmul.f32 %v2956_v62, %v2954_v33 }
 0x40f   : > { %v1470_v0 = vpack.c.bf16 %v1468_v63, %v1468_v63 }
 0x411   : > { %2714 = vmatmul.msk.bf16.vlgmr.msrb.gmra.mxu1 %vm1191_vm10, %v1470_v0 }
 0x421   : > { %2745 = vmatmul.msk.bf16.vlgmr.msra.gmra.mxu1 %vm996_vm1, %v3331_v1 }
 0x472   : > { %v3429_v47 = vpop.f32.mrf.mxu3 }
 0x473   : > { %v1449_v2 = vpop.xlane.xlu0 %1448 }
 0x474   : > { %v1453_v4 = vsub.f32 %v1425_v54, %v1449_v2 }
 0x476   : > { %v1455_v6 = vmul.f32 1.442695, %v1453_v4 }
 0x478   : > { %2957 = vpow2.f32 %v1455_v6 }
 0x47a   : > { %v1549_v49 = vpop.f32.mrf.mxu3 }
 0x47e   : > { %v2958_v7 = vpop.eup %2957 }
 0x47f   : > { %v1459_v8 = vsel %vm1191_vm10, %v2958_v7, 0.0 }
 0x480   : > { %1460 = vadd.xlane.f32.xlu2 %v1459_v8 }
 0x48e   : > { %v1505_v9 = vpop.f32.mrf.mxu1 }
 0x496   : > { %v1507_v10 = vpop.f32.mrf.mxu1 }
 0x49e   : > { %v1619_v12 = vpop.f32.mrf.mxu1 }
 0x49f   : > { %v1620_v14 = vadd.f32 %v2928_v11, %v1619_v12 }
 0x4a1   : > { %v1662_v15 = vpack.c.bf16 %v1620_v14, %v1620_v14 }
 0x4a3   : > { %v1670_v16 = vsel %vm1191_vm10, %v1662_v15, 0 }
 0x4a4   : > { %1679 = vmatpush.bf16.xpose.msra.mxu3 %v1670_v16 }
 0x4a6   : > { %v1621_v20 = vpop.f32.mrf.mxu1 }
 0x4a7   : > { %v1622_v21 = vadd.f32 %v2928_v11, %v1621_v20  ;;  %v2876_v20 = vld [vmem:[%s3242_s30 + $0x38] sm:$0xff] }
 0x4a9   : > { %v1663_v23 = vpack.c.bf16 %v1622_v21, %v1622_v21  ;;  %v2873_v21 = vld [vmem:[%s3232_s25 + $0x30] sm:$0xff] }
 0x4ab   : > { %v1689_v26 = vsel %vm1191_vm10, %v1663_v23, 0 }
 0x4f3   : > { %v1461_v19 = vpop.xlane.xlu2 %1460 }
 0x4f4   : > { %2959 = vrcp.f32 %v1461_v19  ;;  %v2874_v19 = vld [vmem:[%s3232_s25 + $0x38] sm:$0xff] }
 0x4fa   : > { %v2960_v22 = vpop.eup %2959 }
 0x4fb   : > { %v1467_v24 = vmul.f32 %v2960_v22, %v2958_v7  ;;  %v2875_v22 = vld [vmem:[%s3242_s30 + $0x30] sm:$0xff]  ;;  %s3638_s30 = scalar_lea.vmem %s3583_s11, %s3207_s23 }
 0x4fd   : > { %v1469_v25 = vpack.c.bf16 %v1467_v24, %v1467_v24 }
 0x4ff   : > { %2713 = vmatmul.msk.bf16.vlgmr.msrb.gmra.mxu0 %vm1191_vm10, %v1469_v25 }
 0x500   : > { %1698 = vmatpush.bf16.xpose.msrb.mxu0 %v1689_v26 }
 0x50f   : > { %2731 = vmatmul.msk.bf16.vlgmr.msra.gmra.mxu0 %vm996_vm1, %v3331_v1 }
 0x510   : > { %1819 = vmatpush.bf16.msra.mxu0 %v2872_v31  ;;  %v2764_v31 = vld [vmem:[%s3257_s26 + $0x8] sm:$0xf] }
 0x514   : > { %1820 = vmatpush.bf16.msra.mxu0 %v2871_v32  ;;  %v1773_v32 = vsel %vm1257_vm11, %v2764_v31, 0 }
 0x515   : > { %1782 = vmatpush.bf16.msrb.mxu3 %v1773_v32 }
 0x57c   : > { %v1486_v33 = vpop.f32.mrf.mxu0 }
 0x57d   : > { %v1509_v36 = vpack.c.bf16 %v1505_v9, %v1486_v33 }
 0x57f   : > { %2716 = vmatmul.msk.bf16.vlgmr.msrb.gmra.mxu2 %vm1191_vm10, %v1509_v36 }
 0x584   : > { %v1488_v37 = vpop.f32.mrf.mxu0 }
 0x58c   : > { %v1583_v39 = vpop.f32.mrf.mxu0 }
 0x58d   : > { %v1584_v42 = vadd.f32 %v2929_v38, %v1583_v39  ;;  %v2932_v39 = vld [vmem:[%s3237_s27 + $0x3] ss:$0 sm:$0xff] }
 0x58f   : > { %v1660_v43 = vpack.c.bf16 %v1584_v42, %v1584_v42  ;;  %2759 = vmatmul.msk.bf16.vlgmr.msra.gmra.mxu2 %vm996_vm1, %v3331_v1 }
 0x591   : > { %2760 = vmatmul.msk.bf16.vlgmr.msra.gmra.mxu3 %vm1191_vm10, %v1660_v43 }
 0x594   : > { %v1585_v44 = vpop.f32.mrf.mxu0 }
 0x595   : > { %v1586_v45 = vadd.f32 %v2929_v38, %v1585_v44 }
 0x597   : > { %v1661_v46 = vpack.c.bf16 %v1586_v45, %v1586_v45 }
 0x599   : > { %2761 = vmatmul.msk.bf16.vlgmr.msrb.gmra.mxu0 %vm1191_vm10, %v1661_v46  ;;  %v2931_v46 = vld [vmem:[%s3636_s6 + $0x3] ss:$0 sm:$0xff] }
 0x5a9   : > { %2779 = vmatmul.msk.bf16.vlgmr.msra.gmra.mxu0 %vm996_vm1, %v3331_v1 }
 0x602   : > { %v3431_v48 = vpop.f32.mrf.mxu2 }
 0x60a   : > { %v1529_v50 = vpop.f32.mrf.mxu2 }
 0x60b   : > { %v3433_v51 = vadd.f32 %v1549_v49, %v1529_v50  ;;  %v2933_v50 = vld [vmem:[%s3247_s22 + $0x3] ss:$0 sm:$0xff] }
 0x612   : > { %v1655_v53 = vpop.f32.mrf.mxu2 }
 0x613   : > { %v1656_v54 = vadd.f32 %v2930_v52, %v1655_v53 }
 0x614   : > { %v1681_v55 = vpop.f32.mrf.mxu3 }
 0x615   : > { %v1664_v56 = vpack.c.bf16 %v1656_v54, %v1656_v54  ;;  %v1682_v57 = vadd.f32 %v1681_v55, %v3368_v40 }
 0x616   : > { %v1700_v58 = vpop.f32.mrf.mxu0 }
 0x617   : > { %v1732_v59 = vsel %vm1257_vm11, %v1664_v56, 0  ;;  %v1701_v60 = vadd.f32 %v1700_v58, %v3370_v41  ;;  %v1704_v61 = vsel %vm1191_vm10, %v1682_v57, -inf }
 0x618   : > { %1741 = vmatpush.bf16.msrb.mxu1 %v1732_v59  ;;  %1705 = vmax.xlane.f32.xlu0 %v1704_v61 }
 0x619   : > { %v1707_v62 = vsel %vm1191_vm10, %v1701_v60, -inf }
 0x61a   : > { %v1657_v63 = vpop.f32.mrf.mxu2  ;;  %1708 = vmax.xlane.f32.xlu1 %v1707_v62 }
 0x61b   : > { %v1658_v0 = vadd.f32 %v2930_v52, %v1657_v63 }
 0x61c   : > { %v1683_v2 = vpop.f32.mrf.mxu3  ;;  %1855 = vmatpush.bf16.msra.mxu1 %v2874_v19 }
 0x61d   : > { %v1665_v4 = vpack.c.bf16 %v1658_v0, %v1658_v0 }
 0x61e   : > { %v1702_v6 = vpop.f32.mrf.mxu0 }
 0x61f   : > { %v1751_v7 = vsel %vm1257_vm11, %v1665_v4, 0 }
 0x620   : > { %1760 = vmatpush.bf16.msrb.mxu2 %v1751_v7  ;;  %1856 = vmatpush.bf16.msra.mxu1 %v2873_v21 }
 0x624   : > { %1891 = vmatpush.bf16.msra.mxu2 %v2876_v20 }
 0x626   : > { %v1822_v45 = vpop.f32.mrf.mxu0 }
 0x627   : > { %v1823_v52 = vadd.f32 %v2931_v46, %v1822_v45 }
 0x628   : > { %1892 = vmatpush.bf16.msra.mxu2 %v2875_v22 }
 0x68b   : > { %v1706_v8 = vpop.xlane.xlu0 %1705 }
 0x68c   : > { %v1710_v9 = vsub.f32 %v1682_v57, %v1706_v8  ;;  %v1899_v57 = vpack.c.bf16 %v1823_v52, %v1823_v52  ;;  %v1548_v8 = vadd.f32 %v3429_v47, %v3431_v48 }
 0x68d   : > { %v1709_v10 = vpop.xlane.xlu1 %1708 }
 0x68e   : > { %v1712_v11 = vmul.f32 1.442695, %v1710_v9  ;;  %v1711_v12 = vsub.f32 %v1701_v60, %v1709_v10  ;;  %v1824_v60 = vpop.f32.mrf.mxu0 }
 0x68f   : > { %v1825_v63 = vadd.f32 %v2931_v46, %v1824_v60  ;;  %v2934_v46 = vld [vmem:[%s3638_s30] ss:$0 sm:$0xff] }
 0x690   : > { %2961 = vpow2.f32 %v1712_v11  ;;  %v1714_v14 = vmul.f32 1.442695, %v1711_v12 }
 0x691   : > { %v1900_v4 = vpack.c.bf16 %v1825_v63, %v1825_v63 }
 0x692   : > { %2963 = vpow2.f32 %v1714_v14 }
 0x696   : > { %v2962_v15 = vpop.eup %2961 }
 0x697   : > { %v1716_v16 = vsel %vm1191_vm10, %v2962_v15, 0.0 }
 0x698   : > { %v2964_v17 = vpop.eup %2963  ;;  %1717 = vadd.xlane.f32.xlu2 %v1716_v16 }
 0x699   : > { %v1719_v18 = vsel %vm1191_vm10, %v2964_v17, 0.0 }
 0x69a   : > { %1720 = vadd.xlane.f32.xlu0 %v1719_v18 }
 0x70b   : > { %v1718_v23 = vpop.xlane.xlu2 %1717 }
 0x70c   : > { %2965 = vrcp.f32 %v1718_v23 }
 0x70d   : > { %v1721_v24 = vpop.xlane.xlu0 %1720 }
 0x70e   : > { %2967 = vrcp.f32 %v1721_v24 }
 0x712   : > { %v2966_v25 = vpop.eup %2965 }
 0x713   : > { %v1724_v26 = vmul.f32 %v2966_v25, %v2962_v15 }
 0x714   : > { %v2968_v27 = vpop.eup %2967 }
 0x715   : > { %v1726_v28 = vpack.c.bf16 %v1724_v26, %v1724_v26  ;;  %v1725_v29 = vmul.f32 %v2968_v27, %v2964_v17 }
 0x717   : > { %v1727_v30 = vpack.c.bf16 %v1725_v29, %v1725_v29  ;;  %2762 = vmatmul.msk.bf16.vlgmr.msrb.gmra.mxu1 %vm1191_vm10, %v1726_v28 }
 0x719   : > { %2763 = vmatmul.msk.bf16.vlgmr.msrb.gmra.mxu2 %vm1191_vm10, %v1727_v30 }
 0x727   : > { %2793 = vmatmul.msk.bf16.vlgmr.msra.gmra.mxu1 %vm996_vm1, %v3331_v1 }
 0x729   : > { %2807 = vmatmul.msk.bf16.vlgmr.msra.gmra.mxu2 %vm996_vm1, %v3331_v1 }
 0x794   : > { %v1743_v33 = vpop.f32.mrf.mxu1 }
 0x79c   : > { %v1745_v36 = vpop.f32.mrf.mxu1  ;;  %v1762_v37 = vpop.f32.mrf.mxu2 }
 0x79d   : > { %v1766_v38 = vpack.c.bf16 %v1762_v37, %v1743_v33  ;;  %v2812_v37 = vld [vmem:[%s3257_s26 + $0xc] sm:$0xf] }
 0x79f   : > { %2765 = vmatmul.msk.bf16.vlgmr.msrb.gmra.mxu3 %vm1191_vm10, %v1766_v38  ;;  %v2012_v38 = vsel %vm1257_vm11, %v2812_v37, 0 }
 0x7a4   : > { %v1764_v42 = vpop.f32.mrf.mxu2  ;;  %v1858_v43 = vpop.f32.mrf.mxu1 }
 0x7a5   : > { %v1859_v44 = vadd.f32 %v2932_v39, %v1858_v43 }
 0x7a7   : > { %v1901_v49 = vpack.c.bf16 %v1859_v44, %v1859_v44 }
 0x7a9   : > { %v1909_v1 = vsel %vm1191_vm10, %v1901_v49, 0 }
 0x7aa   : > { %1918 = vmatpush.bf16.xpose.msra.mxu3 %v1909_v1 }
 0x7ac   : > { %v1860_v53 = vpop.f32.mrf.mxu1  ;;  %v1894_v54 = vpop.f32.mrf.mxu2 }
 0x7ad   : > { %v1861_v55 = vadd.f32 %v2932_v39, %v1860_v53  ;;  %v1895_v56 = vadd.f32 %v2933_v50, %v1894_v54 }
 0x7af   : > { %v1902_v58 = vpack.c.bf16 %v1861_v55, %v1861_v55  ;;  %v1903_v59 = vpack.c.bf16 %v1895_v56, %v1895_v56 }
 0x7b1   : > { %v1928_v61 = vsel %vm1191_vm10, %v1902_v58, 0  ;;  %v1971_v62 = vsel %vm1257_vm11, %v1903_v59, 0  ;;  %2808 = vmatmul.msk.bf16.vlgmr.msra.gmra.mxu3 %vm1191_vm10, %v1899_v57 }
 0x7b2   : > { %1937 = vmatpush.bf16.xpose.msrb.mxu0 %v1928_v61  ;;  %1980 = vmatpush.bf16.msrb.mxu1 %v1971_v62 }
 0x7b3   : > { %2021 = vmatpush.bf16.msrb.mxu3 %v2012_v38 }
 0x7b4   : > { %v1896_v0 = vpop.f32.mrf.mxu2 }
 0x7b5   : > { %v1897_v2 = vadd.f32 %v2933_v50, %v1896_v0 }
 0x7b7   : > { %v1904_v6 = vpack.c.bf16 %v1897_v2, %v1897_v2 }
 0x7b9   : > { %v1990_v7 = vsel %vm1257_vm11, %v1904_v6, 0  ;;  %2809 = vmatmul.msk.bf16.vlgmr.msrb.gmra.mxu0 %vm1191_vm10, %v1900_v4 }
 0x7ba   : > { %1999 = vmatpush.bf16.msrb.mxu2 %v1990_v7 }
 0x822   : > { %v1784_v9 = vpop.f32.mrf.mxu3 }
 0x823   : > { %v1789_v10 = vadd.f32 %v1784_v9, %v1548_v8  ;;  %v2878_v9 = vld [vmem:[%s3270_s8 + $0x8] sm:$0xff] }
 0x824   : > { %2130 = vmatpush.bf16.msra.mxu0 %v2878_v9 }
 0x82a   : > { %v1786_v11 = vpop.f32.mrf.mxu3 }
 0x82b   : > { %v1790_v12 = vadd.f32 %v1786_v11, %v3433_v51 }
 0x834   : > { %v1920_v14 = vpop.f32.mrf.mxu3 }
 0x835   : > { %v1921_v15 = vadd.f32 %v1920_v14, %v3368_v40 }
 0x836   : > { %v1939_v16 = vpop.f32.mrf.mxu0 }
 0x837   : > { %v1940_v17 = vadd.f32 %v1939_v16, %v3370_v41  ;;  %v1943_v18 = vsel %vm1191_vm10, %v1921_v15, -inf }
 0x838   : > { %1944 = vmax.xlane.f32.xlu2 %v1943_v18 }
 0x839   : > { %v1946_v19 = vsel %vm1191_vm10, %v1940_v17, -inf }
 0x83a   : > { %1947 = vmax.xlane.f32.xlu1 %v1946_v19 }
 0x83c   : > { %v1922_v20 = vpop.f32.mrf.mxu3 }
 0x83e   : > { %v1941_v21 = vpop.f32.mrf.mxu0 }
 0x8ab   : > { %v1945_v47 = vpop.xlane.xlu2 %1944 }
 0x8ac   : > { %v1949_v48 = vsub.f32 %v1921_v15, %v1945_v47 }
 0x8ad   : > { %v1948_v22 = vpop.xlane.xlu1 %1947 }
 0x8ae   : > { %v1951_v23 = vmul.f32 1.442695, %v1949_v48  ;;  %v1950_v24 = vsub.f32 %v1940_v17, %v1948_v22 }
 0x8b0   : > { %2969 = vpow2.f32 %v1951_v23  ;;  %v1953_v51 = vmul.f32 1.442695, %v1950_v24  ;;  %v2935_v23 = vld [vmem:[%s959_s18] ss:$0 sm:$0xff] }
 0x8b2   : > { %2971 = vpow2.f32 %v1953_v51 }
 0x8b6   : > { %v2970_v40 = vpop.eup %2969 }
 0x8b7   : > { %v1955_v25 = vsel %vm1191_vm10, %v2970_v40, 0.0 }
 0x8b8   : > { %v2972_v41 = vpop.eup %2971  ;;  %1956 = vadd.xlane.f32.xlu1 %v1955_v25  ;;  %v2936_v25 = vld [vmem:[%s962_s1] ss:$0 sm:$0xff] }
 0x8b9   : > { %v1958_v26 = vsel %vm1191_vm10, %v2972_v41, 0.0 }
 0x8ba   : > { %1959 = vadd.xlane.f32.xlu0 %v1958_v26 }
 0x92b   : > { %v1957_v27 = vpop.xlane.xlu1 %1956 }
 0x92c   : > { %2973 = vrcp.f32 %v1957_v27 }
 0x92d   : > { %v1960_v28 = vpop.xlane.xlu0 %1959 }
 0x92e   : > { %2975 = vrcp.f32 %v1960_v28 }
 0x932   : > { %v2974_v29 = vpop.eup %2973 }
 0x933   : > { %v1963_v30 = vmul.f32 %v2974_v29, %v2970_v40 }
 0x934   : > { %v2976_v31 = vpop.eup %2975 }
 0x935   : > { %v1965_v32 = vpack.c.bf16 %v1963_v30, %v1963_v30  ;;  %v1964_v33 = vmul.f32 %v2976_v31, %v2972_v41 }
 0x937   : > { %v1966_v36 = vpack.c.bf16 %v1964_v33, %v1964_v33  ;;  %2810 = vmatmul.msk.bf16.vlgmr.msrb.gmra.mxu1 %vm1191_vm10, %v1965_v32 }
 0x939   : > { %2811 = vmatmul.msk.bf16.vlgmr.msrb.gmra.mxu2 %vm1191_vm10, %v1966_v36 }
 0x9b4   : > { %v1982_v39 = vpop.f32.mrf.mxu1 }
 0x9bc   : > { %v1984_v42 = vpop.f32.mrf.mxu1  ;;  %v2001_v43 = vpop.f32.mrf.mxu2 }
 0x9bd   : > { %v2005_v44 = vpack.c.bf16 %v2001_v43, %v1982_v39  ;;  %v2882_v39 = vld [vmem:[%s3280_s10 + $0x18] sm:$0xff]  ;;  %v2881_v42 = vld [vmem:[%s3280_s10 + $0x10] sm:$0xff]  ;;  %v2880_v43 = vld [vmem:[%s3280_s10 + $0x8] sm:$0xff] }
 0x9be   : > { %2201 = vmatpush.bf16.msra.mxu1 %v2882_v39 }
 0x9bf   : > { %2813 = vmatmul.msk.bf16.vlgmr.msrb.gmra.mxu3 %vm1191_vm10, %v2005_v44  ;;  %v2937_v44 = vld [vmem:[%s970_s19] ss:$0 sm:$0xff] }
 0x9c2   : > { %2202 = vmatpush.bf16.msra.mxu1 %v2881_v42 }
 0x9c4   : > { %v2003_v45 = vpop.f32.mrf.mxu2 }
 0x9c6   : > { %2203 = vmatpush.bf16.msra.mxu1 %v2880_v43 }
 0xa42   : > { %v2023_v49 = vpop.f32.mrf.mxu3 }
 0xa43   : > { %v2028_v1 = vadd.f32 %v2023_v49, %v1789_v10  ;;  %v2877_v10 = vld [vmem:[%s3270_s8] sm:$0xff] }
 0xa44   : > { %2131 = vmatpush.bf16.msra.mxu0 %v2877_v10  ;;  %v2938_v10 = vld [vmem:[%s978_s3] ss:$0 sm:$0xff]  ;;  %s3639_s3 = sld [smem:[#allocation23_spill]] (!%p2840_p7) }
 0xa45   : > { %v2034_v50 = vadd.f32 %v2934_v46, %v2028_v1 }
 0xa47   : > { %v3486_v52 = vadd.f32 %v2034_v50, %v3293_v3 }
 0xa49   : > { %v2040_v53 = vsel %vm996_vm1, %v3486_v52, 0.0 }
 0xa4a   : > { %2041 = vadd.xlane.f32.xlu2 %v2040_v53  ;;  %v2025_v54 = vpop.f32.mrf.mxu3 }
 0xa4b   : > { %v2029_v55 = vadd.f32 %v2025_v54, %v1790_v12 }
 0xa4d   : > { %v2035_v56 = vadd.f32 %v2934_v46, %v2029_v55  ;;  %v2879_v46 = vld [vmem:[%s3280_s10] sm:$0xff] }
 0xa4e   : > { %2204 = vmatpush.bf16.msra.mxu1 %v2879_v46 }
 0xa4f   : > { %v3491_v57 = vadd.f32 %v2035_v56, %v3297_v5 }
 0xa51   : > { %v2043_v58 = vsel %vm996_vm1, %v3491_v57, 0.0 }
 0xa52   : > { %2044 = vadd.xlane.f32.xlu0 %v2043_v58 }
 0xabd   : > { %v2042_v59 = vpop.xlane.xlu2 %2041 }
 0xabe   : > { %v2046_v60 = vmul.f32 %v2042_v59, %v3301_v13 }
 0xac0   : > { %v2048_v3 = vsub.f32 %v3486_v52, %v2046_v60 }
 0xac2   : > { %v2050_v61 = vmul.f32 %v2048_v3, %v2048_v3 }
 0xac4   : > { %v2052_v62 = vsel %vm996_vm1, %v2050_v61, 0.0 }
 0xac5   : > { %2053 = vadd.xlane.f32.xlu1 %v2052_v62  ;;  %v2045_v63 = vpop.xlane.xlu0 %2044 }
 0xac6   : > { %v2047_v0 = vmul.f32 %v2045_v63, %v3301_v13 }
 0xac8   : > { %v2049_v5 = vsub.f32 %v3491_v57, %v2047_v0 }
 0xaca   : > { %v2051_v2 = vmul.f32 %v2049_v5, %v2049_v5 }
 0xacc   : > { %v2055_v4 = vsel %vm996_vm1, %v2051_v2, 0.0 }
 0xacd   : > { %2056 = vadd.xlane.f32.xlu2 %v2055_v4 }
 0xb38   : > { %v2054_v6 = vpop.xlane.xlu1 %2053 }
 0xb39   : > { %v2058_v7 = vmul.f32 %v2054_v6, %v3301_v13 }
 0xb3b   : > { %v2060_v8 = vadd.f32 1e-12, %v2058_v7 }
 0xb3d   : > { %2977 = vrsqrt.f32 %v2060_v8  ;;  %vm2068_vm13 = vweird.f32 %v2060_v8 }
 0xb40   : > { %v2057_v11 = vpop.xlane.xlu2 %2056 }
 0xb41   : > { %v2059_v12 = vmul.f32 %v2057_v11, %v3301_v13 }
 0xb43   : > { %v2978_v14 = vpop.eup %2977  ;;  %v2061_v15 = vadd.f32 1e-12, %v2059_v12 }
 0xb44   : > { %v2063_v16 = vmul.f32 %v2978_v14, %v2060_v8  ;;  %vm2069_vm12 = vweird.f32 %v2978_v14 }
 0xb45   : > { %2979 = vrsqrt.f32 %v2061_v15  ;;  %vm2070_vm14 = vmor %vm2068_vm13, %vm2069_vm12  ;;  %vm2078_vm0 = vweird.f32 %v2061_v15 }
 0xb46   : > { %v2064_v17 = vmul.f32 %v2978_v14, %v2063_v16 }
 0xb48   : > { %v2065_v18 = vmul.f32 0.5, %v2064_v17 }
 0xb4a   : > { %v2066_v19 = vsub.f32 1.5, %v2065_v18 }
 0xb4b   : > { %v2980_v20 = vpop.eup %2979 }
 0xb4c   : > { %v2067_v21 = vmul.f32 %v2978_v14, %v2066_v19  ;;  %v2073_v47 = vmul.f32 %v2980_v20, %v2061_v15  ;;  %vm2079_vm15 = vweird.f32 %v2980_v20 }
 0xb4d   : > { %vm2080_vm2 = vmor %vm2078_vm0, %vm2079_vm15 }
 0xb4e   : > { %v2071_v48 = vsel %vm2070_vm14, %v2978_v14, %v2067_v21  ;;  %v2074_v22 = vmul.f32 %v2980_v20, %v2073_v47 }
 0xb4f   : > { %v2082_v24 = vmul.f32 %v2071_v48, %v2048_v3 }
 0xb50   : > { %v2075_v51 = vmul.f32 0.5, %v2074_v22 }
 0xb51   : > { %v2087_v41 = vmul.f32 %v2935_v23, %v2082_v24 }
 0xb52   : > { %v2076_v40 = vsub.f32 1.5, %v2075_v51 }
 0xb53   : > { %v2092_v28 = vadd.f32 %v2936_v25, %v2087_v41 }
 0xb54   : > { %v2077_v26 = vmul.f32 %v2980_v20, %v2076_v40 }
 0xb55   : > { %v2094_v31 = vpack.c.bf16 %v2092_v28, %v2092_v28 }
 0xb56   : > { %v2081_v27 = vsel %vm2080_vm2, %v2980_v20, %v2077_v26 }
 0xb57   : > { %v2083_v29 = vmul.f32 %v2081_v27, %v2049_v5  ;;  %v2106_v36 = vunpack.c.l.b16 %v2094_v31 }
 0xb59   : > { %v2088_v30 = vmul.f32 %v2935_v23, %v2083_v29 }
 0xb5b   : > { %v2093_v32 = vadd.f32 %v2936_v25, %v2088_v30 }
 0xb5d   : > { %v2095_v33 = vpack.c.bf16 %v2093_v32, %v2093_v32 }
 0xb5f   : > { %v2107_v37 = vunpack.c.l.b16 %v2095_v33 }
 0xb61   : > { %v2108_v38 = vpack.c.b16 %v2107_v37, %v2106_v36 }
 0xb63   : > { %2822 = vmatmul.msk.bf16.vlgmr.msra.gmra.mxu0 %vm996_vm1, %v2108_v38 }
 0xbe0   : > { %v2133_v45 = vpop.f32.mrf.mxu0 }
 0xbe1   : > { %v2134_v49 = vadd.f32 %v2937_v44, %v2133_v45 }
 0xbe3   : > { %v2138_v1 = vmul.f32 %v2134_v49, %v2134_v49 }
 0xbe5   : > { %v2140_v50 = vmul.f32 %v2138_v1, %v2134_v49 }
 0xbe7   : > { %v2142_v53 = vmul.f32 0.044715, %v2140_v50 }
 0xbe8   : > { %v2135_v54 = vpop.f32.mrf.mxu0 }
 0xbe9   : > { %v2144_v55 = vadd.f32 %v2142_v53, %v2134_v49  ;;  %v2136_v56 = vadd.f32 %v2937_v44, %v2135_v54 }
 0xbeb   : > { %v2146_v58 = vmul.f32 0.7978846, %v2144_v55  ;;  %v2139_v59 = vmul.f32 %v2136_v56, %v2136_v56 }
 0xbed   : > { %v2141_v60 = vmul.f32 %v2139_v59, %v2136_v56  ;;  %2981 = vtanh.f32 %v2146_v58 }
 0xbef   : > { %v2143_v3 = vmul.f32 0.044715, %v2141_v60 }
 0xbf1   : > { %v2145_v61 = vadd.f32 %v2143_v3, %v2136_v56 }
 0xbf3   : > { %v2147_v62 = vmul.f32 0.7978846, %v2145_v61  ;;  %v2982_v63 = vpop.eup %2981 }
 0xbf4   : > { %v2150_v0 = vadd.f32 1.0, %v2982_v63 }
 0xbf5   : > { %2983 = vtanh.f32 %v2147_v62 }
 0xbf6   : > { %v2152_v2 = vmul.f32 0.5, %v2150_v0 }
 0xbf8   : > { %v2154_v7 = vmul.f32 %v2152_v2, %v2134_v49 }
 0xbfb   : > { %v2984_v5 = vpop.eup %2983 }
 0xbfc   : > { %v2151_v4 = vadd.f32 1.0, %v2984_v5 }
 0xbfe   : > { %v2153_v6 = vmul.f32 0.5, %v2151_v4 }
 0xc00   : > { %v2155_v8 = vmul.f32 %v2153_v6, %v2136_v56 }
 0xc02   : > { %v2156_v9 = vpack.c.bf16 %v2155_v8, %v2154_v7 }
 0xc04   : > { %2839 = vmatmul.msk.bf16.vlgmr.msra.gmra.mxu1 %vm2193_vm3, %v2156_v9 }
 0xc81   : > { %v2206_v11 = vpop.f32.mrf.mxu1 }
 0xc82   : > { %v2207_v12 = vadd.f32 %v2938_v10, %v2206_v11 }
 0xc84   : > { %v2211_v14 = vadd.f32 %v2207_v12, %v3486_v52 }
 0xc86   : > { %2213 = vst.msk [vmem:[#allocation2] sm:$0xff] %vm996_vm1, %v2211_v14 }
 0xc89   : > { %v2208_v15 = vpop.f32.mrf.mxu1 }
 0xc8a   : > { %v2209_v16 = vadd.f32 %v2938_v10, %v2208_v15  ;;  %2218 = sbr.rel (%p2840_p7) target bundleno = 3736 (0xe98), region = 116 }
 0xc8c   : > { %v2212_v17 = vadd.f32 %v2209_v16, %v3491_v57 }
 0xc8e   : > { %2214 = vst.msk [vmem:[#allocation2 + $0x8] sm:$0xff] %vm996_vm1, %v2212_v17 }
 0xc8f   : > { %v2221_v18 = vsel %vm996_vm1, %v2211_v14, 0.0  ;;  %v2224_v19 = vsel %vm996_vm1, %v2212_v17, 0.0  ;;  %v2334_v27 = vlaneseq  ;;  %v2287_v28 = vld [vmem:[#allocation3] sm:$0x1]  ;;  %v2332_v38 = vperm.slane %v3359_v34, 0 }
 0xc90   : > { %2222 = vadd.xlane.f32.xlu0 %v2221_v18  ;;  %2883 = vpush %v2287_v28  ;;  %v2333_v39 = vperm.slane %v3364_v35, 0  ;;  %v2989_v45 = vld [vmem:[%s3639_s3] ss:$0 sm:$0xff]  ;;  %v3061_v4 = vmov 0   ;;  %vm2364_vm2 = vcmask 57344  }
 0xc91   : > { %v2335_v30 = vshrl.u32 %v2334_v27, 7  ;;  %v2990_v34 = vld [vmem:[%s3640_s5] ss:$0 sm:$0xff]  ;;  %2987 = vset.pattern.permute.xlu2 %v3061_v4 }
 0xc92   : > { %v2991_v53 = vld [vmem:[%s3641_s24] ss:$0 sm:$0xff] }
 0xc93   : > { %2985 = vset.pattern.permute.xlu0 %v2335_v30  ;;  %2986 = vset.pattern.permute.xlu1 %v2335_v30 }
 0xc98   : > { %2225 = vadd.xlane.f32.xlu0 %v2224_v19 }
 0xcac   : > { %2338 = vperm.xlu0 %2985, %v2332_v38  }
 0xcb4   : > { %2988 = vset.pattern.permute.xlu0 %v3061_v4 }
 0xcc1   : > { %s2884_s2 = spop %2883 }
 0xcc2   : > { %v2289_v5 = vstv %s2884_s2 }
 0xd03   : > { %v2223_v20 = vpop.xlane.xlu0 %2222 }
 0xd04   : > { %v2227_v52 = vmul.f32 %v2223_v20, %v3301_v13 }
 0xd06   : > { %v2229_v21 = vsub.f32 %v2211_v14, %v2227_v52 }
 0xd08   : > { %v2231_v47 = vmul.f32 %v2229_v21, %v2229_v21 }
 0xd0a   : > { %v2233_v48 = vsel %vm996_vm1, %v2231_v47, 0.0 }
 0xd0b   : > { %2234 = vadd.xlane.f32.xlu1 %v2233_v48  ;;  %v2226_v57 = vpop.xlane.xlu0 %2225 }
 0xd0c   : > { %v2228_v22 = vmul.f32 %v2226_v57, %v3301_v13 }
 0xd0e   : > { %v2230_v23 = vsub.f32 %v2212_v17, %v2228_v22 }
 0xd10   : > { %v2232_v24 = vmul.f32 %v2230_v23, %v2230_v23 }
 0xd12   : > { %v2236_v51 = vsel %vm996_vm1, %v2232_v24, 0.0 }
 0xd13   : > { %2237 = vadd.xlane.f32.xlu1 %v2236_v51 }
 0xd1e   : > { %v2339_v48 = vpop.permute.xlu0 %2338 }
 0xd2c   : > { %2344 = vperm.xlu1 %2986, %v2333_v39  }
 0xd7e   : > { %v2235_v40 = vpop.xlane.xlu1 %2234 }
 0xd7f   : > { %v2239_v25 = vmul.f32 %v2235_v40, %v3301_v13 }
 0xd81   : > { %v2241_v41 = vadd.f32 1e-12, %v2239_v25 }
 0xd83   : > { %2992 = vrsqrt.f32 %v2241_v41  ;;  %vm2249_vm5 = vweird.f32 %v2241_v41 }
 0xd86   : > { %v2238_v26 = vpop.xlane.xlu1 %2237 }
 0xd87   : > { %v2240_v29 = vmul.f32 %v2238_v26, %v3301_v13 }
 0xd89   : > { %v2993_v31 = vpop.eup %2992  ;;  %v2242_v32 = vadd.f32 1e-12, %v2240_v29 }
 0xd8a   : > { %v2244_v33 = vmul.f32 %v2993_v31, %v2241_v41  ;;  %vm2250_vm4 = vweird.f32 %v2993_v31 }
 0xd8b   : > { %2994 = vrsqrt.f32 %v2242_v32  ;;  %vm2251_vm6 = vmor %vm2249_vm5, %vm2250_vm4  ;;  %vm2259_vm8 = vweird.f32 %v2242_v32 }
 0xd8c   : > { %v2245_v36 = vmul.f32 %v2993_v31, %v2244_v33 }
 0xd8e   : > { %v2246_v37 = vmul.f32 0.5, %v2245_v36  ;;  %v2359_v36 = vand.u32 127, %v2334_v27 }
 0xd90   : > { %v2247_v42 = vsub.f32 1.5, %v2246_v37 }
 0xd91   : > { %v2995_v43 = vpop.eup %2994 }
 0xd92   : > { %v2248_v44 = vmul.f32 %v2993_v31, %v2247_v42  ;;  %v2254_v13 = vmul.f32 %v2995_v43, %v2242_v32  ;;  %vm2260_vm7 = vweird.f32 %v2995_v43 }
 0xd93   : > { %vm2261_vm9 = vmor %vm2259_vm8, %vm2260_vm7 }
 0xd94   : > { %v2255_v46 = vmul.f32 %v2995_v43, %v2254_v13  ;;  %v2252_v49 = vsel %vm2251_vm6, %v2993_v31, %v2248_v44 }
 0xd95   : > { %v2263_v1 = vmul.f32 %v2252_v49, %v2229_v21 }
 0xd96   : > { %v2256_v35 = vmul.f32 0.5, %v2255_v46 }
 0xd97   : > { %v2268_v50 = vmul.f32 %v2989_v45, %v2263_v1 }
 0xd98   : > { %v2257_v54 = vsub.f32 1.5, %v2256_v35 }
 0xd99   : > { %v2273_v55 = vadd.f32 %v2990_v34, %v2268_v50 }
 0xd9a   : > { %v2258_v56 = vmul.f32 %v2995_v43, %v2257_v54 }
 0xd9b   : > { %v2279_v58 = vmul.f32 %v2991_v53, %v2273_v55 }
 0xd9c   : > { %v2262_v59 = vsel %vm2261_vm9, %v2995_v43, %v2258_v56 }
 0xd9d   : > { %v2281_v60 = vsel %vm996_vm1, %v2279_v58, 0.0  ;;  %v2264_v3 = vmul.f32 %v2262_v59, %v2230_v23 }
 0xd9e   : > { %2282 = vadd.xlane.f32.xlu2 %v2281_v60  ;;  %v2345_v29 = vpop.permute.xlu1 %2344 }
 0xd9f   : > { %v2269_v61 = vmul.f32 %v2989_v45, %v2264_v3 }
 0xda1   : > { %v2274_v62 = vadd.f32 %v2990_v34, %v2269_v61 }
 0xda3   : > { %v2280_v63 = vmul.f32 %v2991_v53, %v2274_v62 }
 0xda5   : > { %v2284_v0 = vsel %vm996_vm1, %v2280_v63, 0.0 }
 0xda6   : > { %2285 = vadd.xlane.f32.xlu2 %v2284_v0 }
 0xe11   : > { %v2283_v2 = vpop.xlane.xlu2 %2282 }
 0xe12   : > { %v2290_v6 = vadd.f32 %v2289_v5, %v2283_v2 }
 0xe14   : > { %v2841_v7 = vmul.f32 -1.442695, %v2290_v6 }
 0xe16   : > { %2996 = vpow2.f32 %v2841_v7 }
 0xe19   : > { %v2286_v8 = vpop.xlane.xlu2 %2285 }
 0xe1a   : > { %v2291_v9 = vadd.f32 %v2289_v5, %v2286_v8 }
 0xe1c   : > { %v2997_v10 = vpop.eup %2996  ;;  %v2842_v11 = vmul.f32 -1.442695, %v2291_v9 }
 0xe1d   : > { %v2298_v12 = vadd.f32 1.0, %v2997_v10 }
 0xe1e   : > { %2998 = vpow2.f32 %v2842_v11 }
 0xe1f   : > { %3000 = vrcp.f32 %v2298_v12  ;;  %v2311_v19 = vand.u32 2147483648, %v2298_v12  ;;  %v2309_v52 = vand.u32 2147483647, %v2298_v12  ;;  %vm2305_vm10 = vweird.f32 %v2298_v12 }
 0xe21   : > { %v2312_v57 = vor.u32 1.1754944e-38, %v2311_v19  ;;  %vm2310_vm12 = vcmp.eq.f32.partialorder %v2309_v52, 8.507059e+37 }
 0xe24   : > { %v2999_v14 = vpop.eup %2998 }
 0xe25   : > { %v3001_v15 = vpop.eup %3000  ;;  %v2299_v16 = vadd.f32 1.0, %v2999_v14 }
 0xe26   : > { %v2301_v17 = vmul.f32 %v3001_v15, %v2298_v12  ;;  %vm2306_vm1 = vweird.f32 %v3001_v15 }
 0xe27   : > { %3002 = vrcp.f32 %v2299_v16  ;;  %vm2307_vm11 = vmor %vm2305_vm10, %vm2306_vm1  ;;  %v2326_v25 = vand.u32 2147483648, %v2299_v16  ;;  %v2324_v26 = vand.u32 2147483647, %v2299_v16  ;;  %vm2320_vm14 = vweird.f32 %v2299_v16 }
 0xe28   : > { %v2302_v18 = vsub.f32 1.0, %v2301_v17 }
 0xe29   : > { %v2327_v30 = vor.u32 1.1754944e-38, %v2326_v25  ;;  %vm2325_vm0 = vcmp.eq.f32.partialorder %v2324_v26, 8.507059e+37 }
 0xe2a   : > { %v2303_v20 = vmul.f32 %v3001_v15, %v2302_v18 }
 0xe2c   : > { %v2304_v21 = vadd.f32 %v3001_v15, %v2303_v20 }
 0xe2d   : > { %v3003_v47 = vpop.eup %3002 }
 0xe2e   : > { %v2308_v22 = vsel %vm2307_vm11, %v3001_v15, %v2304_v21  ;;  %v2316_v23 = vmul.f32 %v3003_v47, %v2299_v16  ;;  %vm2321_vm13 = vweird.f32 %v3003_v47 }
 0xe2f   : > { %v2313_v24 = vsel %vm2310_vm12, %v2312_v57, %v2308_v22  ;;  %vm2322_vm15 = vmor %vm2320_vm14, %vm2321_vm13 }
 0xe30   : > { %v2348_v51 = vmul.f32 %v2339_v48, %v2313_v24  ;;  %v2317_v40 = vsub.f32 1.0, %v2316_v23 }
 0xe32   : > { %2353 = vperm.xlu2 %2987, %v2348_v51   ;;  %v2318_v41 = vmul.f32 %v3003_v47, %v2317_v40 }
 0xe34   : > { %v2319_v28 = vadd.f32 %v3003_v47, %v2318_v41 }
 0xe36   : > { %v2323_v31 = vsel %vm2322_vm15, %v3003_v47, %v2319_v28 }
 0xe37   : > { %v2328_v32 = vsel %vm2325_vm0, %v2327_v30, %v2323_v31 }
 0xe38   : > { %v2349_v33 = vmul.f32 %v2345_v29, %v2328_v32 }
 0xe3a   : > { %2356 = vperm.xlu2 %2987, %v2349_v33  }
 0xe8c   : > { %v2354_v37 = vpop.permute.xlu2 %2353 }
 0xe8d   : > { %v2360_v38 = vperm.slane %v2354_v37, %v2359_v36 }
 0xe8f   : > { %2365 = vst.msk [vmem:[#allocation4] sm:$0x1] %vm2364_vm2, %v2360_v38 }
 0xe94   : > { %v2357_v39 = vpop.permute.xlu2 %2356 }
 0xe95   : > { %v2361_v42 = vperm.slane %v2357_v39, %v2359_v36 }
 0xe97   : > { %2366 = vst.msk [vmem:[#allocation4 + $0x1] sm:$0x1] %vm2364_vm2, %v2361_v42 }
 0xe98 PF: > { %s3642_s21 = sld [smem:[#allocation8_spill]]  ;;  %s3062_s26 = smov [#allocation4]  }
 0xe99   : > { %s3644_s8 = sld [smem:[#allocation26_spill]]  ;;  %s2374_s9 = sshll.u32 %s3062_s26, 4  ;;  %s2375_s9 = int_to_ptr.vmem [resolvable:$true] %s2374_s9 }
 0xe9a   : > { %s3063_s18 = smov 16   ;;  %s3064_s1 = smov 1  }
 0xe9e   : > { %s3643_s27 = sadd.s32 4294967295, %s3642_s21  }
 0xe9f   : > { %p2889_p8 = scmp.eq.s32.totalorder %s3643_s27, 1  ;;  %s2376_s22 = sshll.u32 %s3644_s8, 4  ;;  %s2377_s22 = int_to_ptr.hbm [resolvable:$true] %s2376_s22 }
 0xea1   : > { %2886 = dma.vmem_to_hbm [thread:$0]  (%p2889_p8), %s2375_s9, 32, %s2377_s22, [#allocation5], %s3063_s18, %s3063_s18, %s3064_s1  }
 0xea2   : > { %3045 = dma.done.wait (%p2889_p8), [#allocation5], 32  }
 0xea3   : > { %3047 = vsyncadd (%p2889_p8), [#allocation5], 4294967264 }
 0xea4 PF: > { %s3645_s10 = sld [smem:[#allocation8_spill]] }
 0xea5   : > { %s3646_s29 = sld [smem:[#allocation7_spill]] }
 0xea6   : > { %s3647_s30 = sld [smem:[#allocation9_spill]] }
 0xeaa   : > { %s35_s4 = sadd.s32 1, %s3645_s10  }
 0xeab   : > { %p32_p9 = scmp.ge.s32.totalorder %s35_s4, 4  }
 0xead   :  { %34 = sbr.rel (!%p32_p9) target bundleno = 18 (0x12), region = 216 }
 0xeb2   :  { %2393 = vsyncpa [#allocation5], 1 }
 0xeb3   :  { %2395 = vsyncpa [#allocation5 + $0x1], 1 }

</bundles_post_ra>
